<compile_context>
chip_gen: v5e
topology: v5e:2x2
jax: 0.10.0
libtpu: 0.0.40
codegen_flags: <defaults>
</compile_context>

<pallas_src>
import functools

import jax
import jax.numpy as jnp
from jax.experimental import pallas as pl
from jax.experimental.pallas import tpu as pltpu

D_MODEL = 768  # hardcoded in the PyTorch module
LANE = 128


def _round_up(n, m):
    return ((n + m - 1) // m) * m


def _make_textcnn_kernel(Bb, L, D, max_ks, c3p, n_pad):
    rows = Bb * L

    def kernel(x_ref, wk_ref, b_ref, mask_ref, wfc_ref, bfc_ref, out_ref,
               xs_ref):
        # x_ref:    [Bb*L, D]            f32   raw hidden states (flattened batch*seq)
        # wk_ref:   [max_ks*D, c3p]      bf16  tap-major, channel-padded conv weight
        # b_ref:    [1, c3p]             f32
        # mask_ref: [L, c3p]             f32   1.0 where t is a valid conv output
        # wfc_ref:  [c3p, n_pad]         f32
        # bfc_ref:  [1, n_pad]           f32
        # out_ref:  [1, Bb, n_pad]       f32
        # xs_ref:   [Bb*L + max_ks-1, D] bf16  scratch: bf16 cast + zero tail

        # In-kernel bf16 cast; zero tail keeps every tap slice in-bounds.
        xs_ref[pl.ds(0, rows), :] = x_ref[...].astype(jnp.bfloat16)
        if max_ks > 1:
            xs_ref[pl.ds(rows, max_ks - 1), :] = jnp.zeros(
                (max_ks - 1, D), jnp.bfloat16)

        # im2col: tap-k slab is scratch rows [k, k+rows); lane-concat then a
        # single K-stacked matmul (K = max_ks*D) with f32 MXU accumulation.
        lhs = jnp.concatenate(
            [xs_ref[pl.ds(k, rows), :] for k in range(max_ks)], axis=-1)
        acc = jnp.dot(lhs, wk_ref[...],
                      preferred_element_type=jnp.float32)        # [rows, c3p]

        # Bias + ReLU, then zero invalid time positions (they also read across
        # the next batch row).  Exact because ReLU output is >= 0.
        s = jnp.maximum(acc + b_ref[...], 0.0)
        s = s.reshape(Bb, L, c3p) * mask_ref[...]
        pooled = jnp.max(s, axis=1)                               # [Bb, c3p]

        # FC head (dropout is the eval-mode identity).
        logits = jnp.dot(pooled, wfc_ref[...],
                         preferred_element_type=jnp.float32) + bfc_ref[...]
        out_ref[0] = logits.astype(out_ref.dtype)

    return kernel


def prepare_textcnn_params(conv_weights, conv_biases, wfc, bfc, *,
                           kernel_sizes, seq_len):
    """One-time packing of conv/FC parameters (hoisted out of the forward).

    conv_weights[i]: [ks_i, 768, C]   (== torch Conv1d weight [C, 768, ks_i] transposed)
    conv_biases[i]:  [1, C]
    wfc:             [len(ks)*C, num_classes]  (== torch Linear weight.T)
    bfc:             [1, num_classes]
    """
    D = conv_weights[0].shape[1]
    C = conv_weights[0].shape[-1]
    c3 = len(kernel_sizes) * C
    c3p = _round_up(max(c3, 1), LANE)
    max_ks = max(kernel_sizes)
    num_classes = wfc.shape[-1]
    n_pad = _round_up(max(num_classes, 1), LANE)
    L = seq_len

    # Branch-stacked, channel-padded, tap-major conv weight -> [max_ks*D, c3p] bf16.
    w_st = jnp.zeros((max_ks, D, c3p), jnp.float32)
    b_st = jnp.zeros((1, c3p), jnp.float32)
    for bi, (ks, w, b) in enumerate(zip(kernel_sizes, conv_weights,
                                        conv_biases)):
        w_st = w_st.at[:ks, :, bi * C:(bi + 1) * C].set(w)
        b_st = b_st.at[:, bi * C:(bi + 1) * C].set(b)
    wk = w_st.reshape(max_ks * D, c3p).astype(jnp.bfloat16)

    # Per-branch time-validity mask: t is a real conv output iff t < L - ks + 1.
    t = jnp.arange(L)[:, None]
    mask = jnp.zeros((L, c3p), jnp.float32)
    for bi, ks in enumerate(kernel_sizes):
        col = (t < (L - ks + 1)).astype(jnp.float32)
        mask = mask.at[:, bi * C:(bi + 1) * C].set(
            jnp.broadcast_to(col, (L, C)))

    # FC padded to a lane-dense 128-wide slab (padded channels / classes are zero).
    wfc_p = jnp.zeros((c3p, n_pad), jnp.float32).at[:c3, :num_classes].set(wfc)
    bfc_p = jnp.zeros((1, n_pad), jnp.float32).at[:, :num_classes].set(bfc)
    return wk, b_st, mask, wfc_p, bfc_p


@functools.partial(jax.jit, static_argnames=("batch_block",))
def textcnn_forward(x, wk, b_st, mask, wfc_p, bfc_p, *, batch_block=8):
    """x: [B, L, 768] float32 (stand-in for bert.last_hidden_state).

    Returns [B, n_pad] logits slab (slice [:, :num_classes] outside).
    batch_block: batch rows per grid step.  On v5e/v6e prefer it as large as B
    (fewest serial grid steps); on v7x keep >= 2 grid steps for both cores.
    """
    B, L, D = x.shape
    kd, c3p = wk.shape
    max_ks = kd // D
    n_pad = wfc_p.shape[-1]

    Bb = min(B, batch_block)
    n_blocks = pl.cdiv(B, Bb)
    B_pad = n_blocks * Bb
    if B_pad != B:
        x = jnp.pad(x, ((0, B_pad - B), (0, 0), (0, 0)))
    x_flat = x.reshape(B_pad * L, D)          # free, layout-preserving reshape
    rows = Bb * L

    kernel = _make_textcnn_kernel(Bb, L, D, max_ks, c3p, n_pad)
    out = pl.pallas_call(
        kernel,
        out_shape=jax.ShapeDtypeStruct((n_blocks, Bb, n_pad), jnp.float32),
        grid=(n_blocks,),
        in_specs=[
            pl.BlockSpec((rows, D), lambda i: (i, 0)),        # x (batch block)
            pl.BlockSpec((kd, c3p), lambda i: (0, 0)),        # conv weight (resident)
            pl.BlockSpec((1, c3p), lambda i: (0, 0)),         # conv bias
            pl.BlockSpec((L, c3p), lambda i: (0, 0)),         # time-validity mask
            pl.BlockSpec((c3p, n_pad), lambda i: (0, 0)),     # fc weight
            pl.BlockSpec((1, n_pad), lambda i: (0, 0)),       # fc bias
        ],
        out_specs=pl.BlockSpec((1, Bb, n_pad), lambda i: (i, 0, 0)),
        scratch_shapes=[pltpu.VMEM((rows + max_ks - 1, D), jnp.bfloat16)],
        compiler_params=pltpu.CompilerParams(
            dimension_semantics=("parallel",)),
    )(x_flat, wk, b_st, mask, wfc_p, bfc_p)

    return out.reshape(B_pad, n_pad)[:B]


if __name__ == "__main__":
    # Small, deterministic configuration consistent with the module.
    B = 8                     # batch (blocked 4 per grid step -> 2 grid steps)
    L = 16                    # sequence length
    D = D_MODEL               # 768, hardcoded in TextCNN.__init__
    C = 32                    # num_channels
    kernel_sizes = (2, 3, 4)
    num_classes = 3
    vocab = 100

    key = jax.random.PRNGKey(0)
    k_ids, k_emb, k_fc, *k_conv = jax.random.split(key, 3 + len(kernel_sizes))

    # Synthetic "BERT" inputs.
    input_ids = jax.random.randint(k_ids, (B, L), 0, vocab)
    attention_mask = jnp.ones((B, L), dtype=jnp.int32)

    # TODO(synk): deterministic embedding lookup stands in for the BERT encoder.
    emb_table = 0.02 * jax.random.normal(k_emb, (vocab, D), dtype=jnp.float32)
    bert_output = jnp.take(emb_table, input_ids, axis=0)          # [B, L, D]
    bert_output = bert_output * attention_mask[..., None].astype(jnp.float32)

    # Deterministic parameter init (shapes follow the nn.Module).
    conv_weights, conv_biases = [], []
    for ks, kk in zip(kernel_sizes, k_conv):
        kw, kb = jax.random.split(kk)
        fan_in = D * ks
        bound = 1.0 / jnp.sqrt(fan_in)
        conv_weights.append(
            jax.random.uniform(kw, (ks, D, C), jnp.float32, -bound, bound))
        conv_biases.append(
            jax.random.uniform(kb, (1, C), jnp.float32, -bound, bound))

    kfw, kfb = jax.random.split(k_fc)
    fc_in = len(kernel_sizes) * C
    fc_bound = 1.0 / jnp.sqrt(fc_in)
    wfc = jax.random.uniform(kfw, (fc_in, num_classes), jnp.float32,
                             -fc_bound, fc_bound)
    bfc = jax.random.uniform(kfb, (1, num_classes), jnp.float32,
                             -fc_bound, fc_bound)

    # One-time parameter packing (outside the per-call jit path).
    wk, b_st, mask, wfc_p, bfc_p = prepare_textcnn_params(
        tuple(conv_weights), tuple(conv_biases), wfc, bfc,
        kernel_sizes=kernel_sizes, seq_len=L)

    logits_pad = textcnn_forward(bert_output, wk, b_st, mask, wfc_p, bfc_p,
                                 batch_block=4)
    jax.block_until_ready(logits_pad)
    logits = logits_pad[:, :num_classes]

    # Pure-JAX reference of the conv/pool/fc head, with the same bf16-rounded
    # matmul operands the kernel uses (accumulation in f32).
    xb = bert_output.astype(jnp.bfloat16).astype(jnp.float32)
    ref_parts = []
    for (ks, w, b) in zip(kernel_sizes, conv_weights, conv_biases):
        wb = w.astype(jnp.bfloat16).astype(jnp.float32)
        outs = []
        for t in range(L - ks + 1):
            acc = sum(jnp.dot(xb[:, t + k, :], wb[k],
                              precision=jax.lax.Precision.HIGHEST)
                      for k in range(ks)) + b
            outs.append(jnp.maximum(acc, 0.0))
        ref_parts.append(jnp.max(jnp.stack(outs, axis=0), axis=0))
    ref_logits = jnp.dot(jnp.concatenate(ref_parts, axis=1), wfc,
                         precision=jax.lax.Precision.HIGHEST) + bfc

    assert jnp.allclose(logits, ref_logits, atol=2e-3, rtol=1e-2), (
        float(jnp.max(jnp.abs(logits - ref_logits))))

    print("KERNEL_OK")
</pallas_src>

<mosaic_0001>
module attributes {stable_mosaic.version = 11 : i64} {
  func.func @kernel(%arg0: i32, %arg1: memref<64x768xf32, #tpu.memory_space<vmem>>, %arg2: memref<3072x128xbf16, #tpu.memory_space<vmem>>, %arg3: memref<1x128xf32, #tpu.memory_space<vmem>>, %arg4: memref<16x128xf32, #tpu.memory_space<vmem>>, %arg5: memref<128x128xf32, #tpu.memory_space<vmem>>, %arg6: memref<1x128xf32, #tpu.memory_space<vmem>>, %arg7: memref<1x4x128xf32, #tpu.memory_space<vmem>>, %arg8: memref<67x768xbf16, #tpu.memory_space<vmem>>) attributes {dimension_semantics = [#tpu.dimension_semantics<parallel>], iteration_bounds = array<i64: 2>, scalar_prefetch = 0 : i64, scratch_operands = 1 : i64, tpu.core_type = #tpu.core_type<tc>, window_params = [{transform_indices = @transform_0, window_bounds = array<i64: 64, 768>}, {pipeline_mode = #tpu.pipeline_mode<synchronous>, transform_indices = @transform_1, window_bounds = array<i64: 3072, 128>}, {pipeline_mode = #tpu.pipeline_mode<synchronous>, transform_indices = @transform_2, window_bounds = array<i64: 1, 128>}, {pipeline_mode = #tpu.pipeline_mode<synchronous>, transform_indices = @transform_3, window_bounds = array<i64: 16, 128>}, {pipeline_mode = #tpu.pipeline_mode<synchronous>, transform_indices = @transform_4, window_bounds = array<i64: 128, 128>}, {pipeline_mode = #tpu.pipeline_mode<synchronous>, transform_indices = @transform_5, window_bounds = array<i64: 1, 128>}, {transform_indices = @transform_6, window_bounds = array<i64: 1, 4, 128>}]} {
    %c0 = arith.constant 0 : index
    %c0_0 = arith.constant 0 : index
    %0 = vector.load %arg1[%c0, %c0_0] : memref<64x768xf32, #tpu.memory_space<vmem>>, vector<64x768xf32>
    %1 = arith.truncf %0 : vector<64x768xf32> to vector<64x768xbf16>
    %c0_1 = arith.constant 0 : index
    %c0_2 = arith.constant 0 : index
    %2 = vector.load %arg8[%c0_1, %c0_2] : memref<67x768xbf16, #tpu.memory_space<vmem>>, vector<64x768xbf16>
    tpu.vector_store %arg8[%c0_1, %c0_2], %1 {strides = array<i32>} : memref<67x768xbf16, #tpu.memory_space<vmem>>, vector<64x768xbf16>,
    %cst = arith.constant 0.000000e+00 : bf16
    %3 = vector.broadcast %cst : bf16 to vector<3x768xbf16>
    %c64 = arith.constant 64 : index
    %c0_3 = arith.constant 0 : index
    %4 = vector.load %arg8[%c64, %c0_3] : memref<67x768xbf16, #tpu.memory_space<vmem>>, vector<3x768xbf16>
    tpu.vector_store %arg8[%c64, %c0_3], %3 {strides = array<i32>} : memref<67x768xbf16, #tpu.memory_space<vmem>>, vector<3x768xbf16>,
    %c0_4 = arith.constant 0 : index
    %c0_5 = arith.constant 0 : index
    %5 = vector.load %arg8[%c0_4, %c0_5] : memref<67x768xbf16, #tpu.memory_space<vmem>>, vector<64x768xbf16>
    %c1 = arith.constant 1 : index
    %c0_6 = arith.constant 0 : index
    %6 = vector.load %arg8[%c1, %c0_6] : memref<67x768xbf16, #tpu.memory_space<vmem>>, vector<64x768xbf16>
    %c2 = arith.constant 2 : index
    %c0_7 = arith.constant 0 : index
    %7 = vector.load %arg8[%c2, %c0_7] : memref<67x768xbf16, #tpu.memory_space<vmem>>, vector<64x768xbf16>
    %c3 = arith.constant 3 : index
    %c0_8 = arith.constant 0 : index
    %8 = vector.load %arg8[%c3, %c0_8] : memref<67x768xbf16, #tpu.memory_space<vmem>>, vector<64x768xbf16>
    %9 = tpu.concatenate %5, %6, %7, %8 in 1 : vector<64x768xbf16>, vector<64x768xbf16>, vector<64x768xbf16>, vector<64x768xbf16> -> vector<64x3072xbf16>
    %c0_9 = arith.constant 0 : index
    %c0_10 = arith.constant 0 : index
    %10 = vector.load %arg2[%c0_9, %c0_10] : memref<3072x128xbf16, #tpu.memory_space<vmem>>, vector<3072x128xbf16>
    %cst_11 = arith.constant dense<0.000000e+00> : vector<64x128xf32>
    %11 = tpu.matmul %9, %10, %cst_11 {dimension_numbers = #tpu.dot_dimension_numbers<[1], [0], [0], [1], [0, 0, 1, 1], [], []>} : vector<64x3072xbf16>, vector<3072x128xbf16>, vector<64x128xf32> -> vector<64x128xf32>
    %c0_12 = arith.constant 0 : index
    %c0_13 = arith.constant 0 : index
    %12 = vector.load %arg3[%c0_12, %c0_13] : memref<1x128xf32, #tpu.memory_space<vmem>>, vector<1x128xf32>
    %13 = vector.broadcast %12 : vector<1x128xf32> to vector<64x128xf32>
    %14 = arith.addf %11, %13 : vector<64x128xf32>
    %cst_14 = arith.constant 0.000000e+00 : f32
    %15 = vector.broadcast %cst_14 : f32 to vector<64x128xf32>
    %16 = arith.maximumf %14, %15 : vector<64x128xf32>
    %17 = vector.shape_cast %16 : vector<64x128xf32> to vector<4x16x128xf32>
    %c0_15 = arith.constant 0 : index
    %c0_16 = arith.constant 0 : index
    %18 = vector.load %arg4[%c0_15, %c0_16] : memref<16x128xf32, #tpu.memory_space<vmem>>, vector<16x128xf32>
    %19 = vector.shape_cast %18 : vector<16x128xf32> to vector<1x16x128xf32>
    %20 = vector.broadcast %19 : vector<1x16x128xf32> to vector<4x16x128xf32>
    %21 = arith.mulf %17, %20 : vector<4x16x128xf32>
    %cst_17 = arith.constant dense<0xFF800000> : vector<4x128xf32>
    %22 = vector.multi_reduction <maximumf>, %21, %cst_17 [1] : vector<4x16x128xf32> to vector<4x128xf32>
    %c0_18 = arith.constant 0 : index
    %c0_19 = arith.constant 0 : index
    %23 = vector.load %arg5[%c0_18, %c0_19] : memref<128x128xf32, #tpu.memory_space<vmem>>, vector<128x128xf32>
    %cst_20 = arith.constant dense<0.000000e+00> : vector<4x128xf32>
    %24 = tpu.matmul %22, %23, %cst_20 {dimension_numbers = #tpu.dot_dimension_numbers<[1], [0], [0], [1], [0, 0, 1, 1], [], []>} : vector<4x128xf32>, vector<128x128xf32>, vector<4x128xf32> -> vector<4x128xf32>
    %c0_21 = arith.constant 0 : index
    %c0_22 = arith.constant 0 : index
    %25 = vector.load %arg6[%c0_21, %c0_22] : memref<1x128xf32, #tpu.memory_space<vmem>>, vector<1x128xf32>
    %26 = vector.broadcast %25 : vector<1x128xf32> to vector<4x128xf32>
    %27 = arith.addf %24, %26 : vector<4x128xf32>
    %c0_23 = arith.constant 0 : index
    %c0_24 = arith.constant 0 : index
    %c0_25 = arith.constant 0 : index
    %28 = vector.load %arg7[%c0_23, %c0_24, %c0_25] : memref<1x4x128xf32, #tpu.memory_space<vmem>>, vector<1x4x128xf32>
    %29 = vector.shape_cast %28 : vector<1x4x128xf32> to vector<4x128xf32>
    %30 = vector.shape_cast %27 : vector<4x128xf32> to vector<1x4x128xf32>
    tpu.vector_store %arg7[%c0_23, %c0_24, %c0_25], %30 {strides = array<i32>} : memref<1x4x128xf32, #tpu.memory_space<vmem>>, vector<1x4x128xf32>,
    return
  }
  func.func @transform_0(%arg0: i32) -> (i32, i32) {
    %c0_i32 = arith.constant 0 : i32
    %c0_i32_0 = arith.constant 0 : i32
    return %arg0, %c0_i32 : i32, i32
  }
  func.func @transform_1(%arg0: i32) -> (i32, i32) {
    %c0_i32 = arith.constant 0 : i32
    %c0_i32_0 = arith.constant 0 : i32
    %c0_i32_1 = arith.constant 0 : i32
    return %c0_i32, %c0_i32_0 : i32, i32
  }
  func.func @transform_2(%arg0: i32) -> (i32, i32) {
    %c0_i32 = arith.constant 0 : i32
    %c0_i32_0 = arith.constant 0 : i32
    %c0_i32_1 = arith.constant 0 : i32
    return %c0_i32, %c0_i32_0 : i32, i32
  }
  func.func @transform_3(%arg0: i32) -> (i32, i32) {
    %c0_i32 = arith.constant 0 : i32
    %c0_i32_0 = arith.constant 0 : i32
    %c0_i32_1 = arith.constant 0 : i32
    return %c0_i32, %c0_i32_0 : i32, i32
  }
  func.func @transform_4(%arg0: i32) -> (i32, i32) {
    %c0_i32 = arith.constant 0 : i32
    %c0_i32_0 = arith.constant 0 : i32
    %c0_i32_1 = arith.constant 0 : i32
    return %c0_i32, %c0_i32_0 : i32, i32
  }
  func.func @transform_5(%arg0: i32) -> (i32, i32) {
    %c0_i32 = arith.constant 0 : i32
    %c0_i32_0 = arith.constant 0 : i32
    %c0_i32_1 = arith.constant 0 : i32
    return %c0_i32, %c0_i32_0 : i32, i32
  }
  func.func @transform_6(%arg0: i32) -> (i32, i32, i32) {
    %c0_i32 = arith.constant 0 : i32
    %c0_i32_0 = arith.constant 0 : i32
    %c0_i32_1 = arith.constant 0 : i32
    return %arg0, %c0_i32, %c0_i32_0 : i32, i32, i32
  }
}

</mosaic_0001>

<bundles_post_ra>
// kernel: textcnn_forward.1
= control target key start
LH: loop header
LB: loop body
LE: loop exit
PB: predicated region body
PF: predicated region fallthrough
CT: control target
= control target key end

     0   :  { %s5932_s0 = inlined_call_operand.hbm [shape: f32[128,768], index: 0, kind: input, shape index: {}]   ;;  %s5933_s1 = inlined_call_operand.hbm [shape: bf16[3072,128], index: 1, kind: input, shape index: {}]   ;;  %s5934_s2 = inlined_call_operand.vmem [shape: f32[1,128], index: 2, kind: input, shape index: {}]   ;;  %s5935_s3 = inlined_call_operand.hbm [shape: f32[16,128], index: 3, kind: input, shape index: {}]   ;;  %s5936_s4 = inlined_call_operand.hbm [shape: f32[128,128], index: 4, kind: input, shape index: {}]   ;;  %s5937_s5 = inlined_call_operand.vmem [shape: f32[1,128], index: 5, kind: input, shape index: {}]   ;;  %s5938_s6 = inlined_call_operand.hbm [shape: f32[2,4,128], index: 6, kind: output, shape index: {}]  }
   0x1   :  { %5975 = sst [smem:[#allocation16_spill]] %s5933_s1 }
   0x2   :  { %5976 = sst [smem:[#allocation17_spill]] %s5935_s3 }
   0x3   :  { %11 = vsyncpa [#allocation4], 0 }
   0x4   :  { %13 = vsyncpa [#allocation4 + $0x1], 0 }
   0x5   :  { %14 = vsyncpa [#allocation7], 0 }
   0x6   :  { %15 = vsyncpa [#allocation10], 0 }
   0x7   :  { %16 = vsyncpa [#allocation5], 0 }
   0x8   :  { %18 = vsyncpa [#allocation5 + $0x1], 0  ;;  %s4999_s21 = smov 0   ;;  %s5001_s22 = smov 0  }
   0x9   :  { %s5003_s23 = smov 0   ;;  %s5005_s24 = smov 0  }
   0xa LB: > { %s5020_s25 = sadd.s32 4294967295, %s4953_s24   ;;  %s3603_s26 = sadd.s32 4294967294, %s4953_s24   ;;  %s4953_s24 = sphi %s5005_s24, %s6027_s24   ;;  %s4949_s23 = sphi %s5003_s23, %s6026_s23   ;;  %s4945_s22 = sphi %s5001_s22, %s6025_s22   ;;  %s4941_s21 = sphi %s4999_s21, %s6024_s21  }
   0xb   : > { %p44_p0 = scmp.ne.s32.totalorder %s4945_s22, %s4941_s21  ;;  %p45_p1 = scmp.eq.s32.totalorder %s5020_s25, 0 }
   0xc   : > { %p173_p2 = scmp.eq.s32.totalorder %s5020_s25, 1  ;;  %p179_p3 = scmp.eq.s32.totalorder %s3603_s26, 1 }
   0xd   : > { %p5029_p4 = por %p45_p1, %p44_p0  ;;  %p3604_p5 = scmp.ge.s32.totalorder %s4953_s24, 1 }
   0xe   : > { %p5034_p6 = por %p179_p3, %p44_p0  ;;  %p186_p7 = scmp.lt.s32.totalorder %s4953_s24, 3 }
   0xf   : > { %s5979_s1 = sld [smem:[#allocation16_spill]]  ;;  %s4955_s9 = smov [#allocation6]  }
  0x10   : > { %p5042_p8 = pnand %p3604_p5, %p186_p7  ;;  %s199_s10 = sshll.u32 %s4955_s9, 4  ;;  %s200_s10 = int_to_ptr.vmem [resolvable:$true] %s199_s10 }
  0x11   : > { %s5982_s3 = sld [smem:[#allocation17_spill]]  ;;  %s4956_s15 = smov 64  }
  0x12   : > { %p4690_p9 = pneg %p5042_p8  ;;  %s4957_s16 = smov 4  }
  0x13   : > { %s4958_s17 = smov [#allocation8]   ;;  %s4959_s19 = smov 128  }
  0x14   : > { %p5050_p10 = pnand %p4690_p9, %p45_p1  ;;  %s216_s18 = sshll.u32 %s4958_s17, 4  ;;  %s217_s18 = int_to_ptr.vmem [resolvable:$true] %s216_s18 }
  0x15   : > { %s197_s7 = sshll.u32 %s5979_s1, 4  ;;  %s4960_s20 = smov 8   ;;  %s198_s7 = int_to_ptr.hbm [resolvable:$true] %s197_s7 }
  0x16   : > { %4693 = dma.hbm_to_vmem [thread:$0]  (!%p5050_p10), %s198_s7, 24576, %s200_s10, [#allocation7], %s4956_s15, %s4956_s15, %s4957_s16  }
  0x17   : > { %s214_s14 = sshll.u32 %s5982_s3, 4  ;;  %s228_s30 = sshll.u32 %s5936_s4, 4  ;;  %s215_s14 = int_to_ptr.hbm [resolvable:$true] %s214_s14  ;;  %s229_s30 = int_to_ptr.hbm [resolvable:$true] %s228_s30 }
  0x18   : > { %4696 = dma.hbm_to_vmem [thread:$0]  (!%p5050_p10), %s215_s14, 256, %s217_s18, [#allocation7], %s4959_s19, %s4959_s19, %s4960_s20  }
  0x19   : > { %s4961_s7 = smov [#allocation9]   ;;  %s5068_s10 = sadd.s32 1, %s4953_s24  }
  0x1a   : > { %s230_s9 = sshll.u32 %s4961_s7, 4  ;;  %s28_s12 = ssub.s32 %s4953_s24, %s5068_s10  ;;  %s231_s9 = int_to_ptr.vmem [resolvable:$true] %s230_s9 }
  0x1b   : > { %4699 = dma.hbm_to_vmem [thread:$0]  (!%p5050_p10), %s229_s30, 2048, %s231_s9, [#allocation10], %s4959_s19, %s4959_s19, %s4960_s20  }
  0x1c   : > { %s31_s13 = sadd.s32 1, %s4949_s23  ;;  %p29_p12 = scmp.eq.s32.totalorder %s28_s12, 0 }
  0x1d   : > { %p38_p13 = scmp.ne.s32.totalorder %s4949_s23, %s4945_s22  ;;  %p39_p0 = scmp.eq.s32.totalorder %s4953_s24, 0 }
  0x1e   : > { %p4711_p3 = scmp.lt.s32.totalorder %s4953_s24, 2  ;;  %s247_s16 = sand.u32 1, %s4949_s23  }
  0x1f   : > { %s5078_s14 = scalar_select %p29_p12, %s4949_s23, %s31_s13  }
  0x20   : > { %p40_p5 = por %p39_p0, %p38_p13  ;;  %p5082_p7 = por %p173_p2, %p38_p13 }
  0x21   : > { %s4672_s11 = smul.u32 384, %s4953_s24  ;;  %s248_s9 = scalar_lea.sflag [#allocation4], %s247_s16 }
  0x22   : > { %s4671_s17 = smul.u32 384, %s247_s16  ;;  %p5091_p9 = pnand %p4711_p3, %p40_p5 }
  0x23   : > { %s257_s20 = scalar_lea.hbm %s5932_s0, %s4672_s11  ;;  %s4856_s19 = scalar_lea.hbm %s5932_s0, 768 }
  0x24   : > { %s258_s29 = sshll.u32 %s257_s20, 4  ;;  %s251_s30 = scalar_lea.vmem [#allocation3], %s4671_s17  ;;  %s259_s29 = int_to_ptr.hbm [resolvable:$true] %s258_s29 }
  0x25   : > { %s260_s7 = sshll.u32 %s251_s30, 4  ;;  %s4849_s12 = sshra.s32 %s259_s29, 4  ;;  %s261_s7 = int_to_ptr.vmem [resolvable:$true] %s260_s7  ;;  %s4850_s12 = int_to_ptr.hbm [resolvable:$true] %s4849_s12 }
  0x26   : > { %s4851_s13 = scalar_lea.hbm %s4850_s12, 384  ;;  %p4853_p10 = pneg %p5091_p9 }
  0x27   : > { %p4852_p2 = scmp.ne.s32.totalorder %s4850_s12, %s4851_s13  ;;  %p4857_p0 = scmp.lt.s32.totalorder %s4850_s12, %s5932_s0 }
  0x28   : > { %p4858_p3 = scmp.lt.s32.totalorder %s4856_s19, %s4851_s13 }
  0x29   : > { %p4854_p12 = pnand %p4853_p10, %p4852_p2 }
  0x2a   : > { %p4859_p5 = por %p4858_p3, %p4857_p0 }
  0x2b   : > { %p4855_p13 = pneg %p4854_p12 }
  0x2d   : > { %p4860_p11 = pnand %p4859_p5, %p4855_p13 }
  0x2f   : > { %4863 = shalt.err (!%p4860_p11)
}
  0x30   : > { %s4962_s16 = smov 768   ;;  %s4963_s17 = smov 48  }
  0x31   : > { %4703 = dma.hbm_to_vmem [thread:$0]  (!%p5091_p9), %s259_s29, 6144, %s261_s7, %s248_s9, %s4962_s16, %s4962_s16, %s4963_s17  }
  0x32   : > { %272 = sbr.rel (%p5042_p8) target bundleno = 756 (0x2f4), region = 44  ;;  %s5108_s20 = sand.u32 (!%p5042_p8), 1, %s4945_s22  }
  0x33   : > { %s4673_s1 = smul.u32 (!%p5042_p8), 384, %s5108_s20  ;;  %s275_s3 = scalar_lea.sflag (!%p5042_p8), [#allocation4], %s5108_s20 }
  0x35   : > { %s5112_s30 = scalar_lea.vmem (!%p5042_p8), [#allocation3], %s4673_s1 }
  0x37   : > { %4924 = dma.done.wait (%p5029_p4), %s275_s3, 6144  }
  0x38   : > { %4926 = vsyncadd (%p5029_p4), %s275_s3, 4294961152 }
  0x39   : > { %4928 = dma.done.wait (%p45_p1), [#allocation7], 24832  }
  0x3a   : > { %4930 = vsyncadd (%p45_p1), [#allocation7], 4294942464 }
  0x3b   : > { %4932 = dma.done.wait (%p45_p1), [#allocation10], 2048  }
  0x3c   : > { %4934 = vsyncadd (%p45_p1), [#allocation10], 4294965248  ;;  %v4486_v0 = vld [vmem:[#allocation6 + $0x38] sm:$0xff]  ;;  %v4485_v4 = vld [vmem:[#allocation6 + $0x30] sm:$0xff]  ;;  %vm605_vm0 = vsmask.f32 7424 }
  0x3d   : > { %v4494_v1 = vld [vmem:[#allocation6 + $0x78] sm:$0xff]  ;;  %2694 = vmatpush.bf16.msra.mxu0 %v4486_v0  ;;  %v4493_v5 = vld [vmem:[#allocation6 + $0x70] sm:$0xff]  ;;  %v4484_v8 = vld [vmem:[#allocation6 + $0x28] sm:$0xff]  ;;  %vm421_vm1 = vcmask 1041408   ;;  %vm422_vm2 = vsmask.f32 1280 }
  0x3e   : > { %v4502_v2 = vld [vmem:[#allocation6 + $0xb8] sm:$0xff]  ;;  %2723 = vmatpush.bf16.msra.mxu1 %v4494_v1  ;;  %v4501_v6 = vld [vmem:[#allocation6 + $0xb0] sm:$0xff]  ;;  %v4492_v9 = vld [vmem:[#allocation6 + $0x68] sm:$0xff]  ;;  %vm424_vm3 = vcmask 1045508   ;;  %vm425_vm4 = vsmask.f32 5376 }
  0x3f   : > { %v4510_v3 = vld [vmem:[#allocation6 + $0xf8] sm:$0xff]  ;;  %2752 = vmatpush.bf16.msra.mxu2 %v4502_v2  ;;  %v4509_v7 = vld [vmem:[#allocation6 + $0xf0] sm:$0xff]  ;;  %v4500_v10 = vld [vmem:[#allocation6 + $0xa8] sm:$0xff]  ;;  %vm861_vm8 = vcmask 1046528   ;;  %vm955_vm9 = vsmask.f32 6400 }
  0x40   : > { %2781 = vmatpush.bf16.msra.mxu3 %v4510_v3  ;;  %v4508_v11 = vld [vmem:[#allocation6 + $0xe8] sm:$0xff]  ;;  %v4483_v12 = vld [vmem:[#allocation6 + $0x20] sm:$0xff]  ;;  %v331_v18 = vld [vmem:[%s5112_s30 + $0x30] sm:$0xff]  ;;  %vm3460_vm10 = vcmask 1041409   ;;  %vm3462_vm11 = vcmask 1042434   ;;  %vm3464_vm12 = vcmask 1043459  }
  0x41   : > { %2695 = vmatpush.bf16.msra.mxu0 %v4485_v4  ;;  %v4491_v13 = vld [vmem:[#allocation6 + $0x60] sm:$0xff]  ;;  %v326_v17 = vld [vmem:[%s5112_s30 + $0x8] sm:$0xff]  ;;  %v332_v19 = vld [vmem:[%s5112_s30 + $0x38] sm:$0xff]  ;;  %s3616_s26 = sshll.u32 %s5108_s20, 2  ;;  %s4458_s29 = sshll.u32 %s5020_s25, 2 }
  0x42   : > { %2724 = vmatpush.bf16.msra.mxu1 %v4493_v5  ;;  %v4499_v14 = vld [vmem:[#allocation6 + $0xa0] sm:$0xff]  ;;  %v327_v21 = vld [vmem:[%s5112_s30 + $0x10] sm:$0xff]  ;;  %v328_v22 = vld [vmem:[%s5112_s30 + $0x18] sm:$0xff]  ;;  %v5135_v24 = vpack.c.bf16 %v332_v19, %v331_v18  ;;  %s3499_s12 = scalar_lea.hbm %s5938_s6, %s4458_s29  ;;  %s322_s18 = scalar_lea.vmem [#allocation11], %s3616_s26 }
  0x43   : > { %2753 = vmatpush.bf16.msra.mxu2 %v4501_v6  ;;  %v4507_v15 = vld [vmem:[#allocation6 + $0xe0] sm:$0xff]  ;;  %v334_v25 = vld [vmem:[%s5112_s30 + $0x48] sm:$0xff]  ;;  %v4482_v26 = vld [vmem:[#allocation6 + $0x18] sm:$0xff]  ;;  %v5139_v28 = vpack.c.bf16 %v328_v22, %v327_v21  ;;  %s3501_s19 = sshll.u32 %s322_s18, 4  ;;  %s3503_s16 = sshll.u32 %s3499_s12, 4  ;;  %s3502_s19 = int_to_ptr.vmem [resolvable:$true] %s3501_s19  ;;  %s3504_s16 = int_to_ptr.hbm [resolvable:$true] %s3503_s16 }
  0x44   : > { %2782 = vmatpush.bf16.msra.mxu3 %v4509_v7  ;;  %v325_v16 = vld [vmem:[%s5112_s30] sm:$0xff]  ;;  %v4490_v27 = vld [vmem:[#allocation6 + $0x58] sm:$0xff]  ;;  %v4481_v32 = vld [vmem:[#allocation6 + $0x10] sm:$0xff]  ;;  %v500_v60 = vunpack.c.l.b16 %v5135_v24  ;;  %v501_v62 = vunpack.c.h.b16 %v5135_v24  ;;  %s3489_s17 = scalar_lea.sflag [#allocation5], %s5108_s20  ;;  %s4893_s1 = sshra.s32 %s3504_s16, 4  ;;  %s4894_s1 = int_to_ptr.hbm [resolvable:$true] %s4893_s1 }
  0x45   : > { %2696 = vmatpush.bf16.msra.mxu0 %v4484_v8  ;;  %v5130_v20 = vpack.c.bf16 %v326_v17, %v325_v16  ;;  %v333_v23 = vld [vmem:[%s5112_s30 + $0x40] sm:$0xff]  ;;  %v4498_v29 = vld [vmem:[#allocation6 + $0x98] sm:$0xff]  ;;  %398 = vst [vmem:[#allocation2 + $0x8] sm:$0xff] %v5139_v28  ;;  %v338_v34 = vld [vmem:[%s5112_s30 + $0x68] sm:$0xff]  ;;  %v496_v4 = vunpack.c.l.b16 %v5139_v28  ;;  %v497_v6 = vunpack.c.h.b16 %v5139_v28  ;;  %s4895_s25 = scalar_lea.hbm %s4894_s1, 4  ;;  %s4899_s27 = scalar_lea.hbm %s5938_s6, 8 }
  0x46   : > { %2725 = vmatpush.bf16.msra.mxu1 %v4492_v9  ;;  %v4506_v30 = vld [vmem:[#allocation6 + $0xd8] sm:$0xff]  ;;  %v5141_v31 = vpack.c.bf16 %v334_v25, %v333_v23  ;;  %v337_v33 = vld [vmem:[%s5112_s30 + $0x60] sm:$0xff]  ;;  %v343_v35 = vld [vmem:[%s5112_s30 + $0x90] sm:$0xff]  ;;  %p4896_p1 = scmp.ne.s32.totalorder %s4894_s1, %s4895_s25  ;;  %p4900_p11 = scmp.lt.s32.totalorder %s4894_s1, %s5938_s6 }
  0x47   : > { %2754 = vmatpush.bf16.msra.mxu2 %v4500_v10  ;;  %397 = vst [vmem:[#allocation2] sm:$0xff] %v5130_v20  ;;  %v344_v36 = vld [vmem:[%s5112_s30 + $0x98] sm:$0xff]  ;;  %v379_v37 = vpack.c.bf16 %v338_v34, %v337_v33  ;;  %v339_v38 = vld [vmem:[%s5112_s30 + $0x70] sm:$0xff]  ;;  %v345_v42 = vld [vmem:[%s5112_s30 + $0xa0] sm:$0xff]  ;;  %v494_v56 = vunpack.c.l.b16 %v5130_v20  ;;  %v495_v61 = vunpack.c.h.b16 %v5130_v20  ;;  %p4901_p9 = scmp.lt.s32.totalorder %s4899_s27, %s4895_s25 }
  0x48   : > { %2783 = vmatpush.bf16.msra.mxu3 %v4508_v11  ;;  %v340_v39 = vld [vmem:[%s5112_s30 + $0x78] sm:$0xff]  ;;  %v4489_v40 = vld [vmem:[#allocation6 + $0x50] sm:$0xff]  ;;  %v382_v41 = vpack.c.bf16 %v344_v36, %v343_v35  ;;  %v346_v43 = vld [vmem:[%s5112_s30 + $0xa8] sm:$0xff]  ;;  %v502_v5 = vunpack.c.l.b16 %v5141_v31  ;;  %v503_v7 = vunpack.c.h.b16 %v5141_v31  ;;  %p4897_p4 = pnand %p4896_p1, %p5082_p7 }
  0x49   : > { %2697 = vmatpush.bf16.msra.mxu0 %v4483_v12  ;;  %v380_v44 = vpack.c.bf16 %v340_v39, %v339_v38  ;;  %v4497_v45 = vld [vmem:[#allocation6 + $0x90] sm:$0xff]  ;;  %403 = vst [vmem:[#allocation2 + $0x30] sm:$0xff] %v379_v37  ;;  %v383_v47 = vpack.c.bf16 %v346_v43, %v345_v42  ;;  %v4480_v48 = vld [vmem:[#allocation6 + $0x8] sm:$0xff]  ;;  %v349_v50 = vld [vmem:[%s5112_s30 + $0xc0] sm:$0xff]  ;;  %p4902_p2 = por %p4901_p9, %p4900_p11 }
  0x4a   : > { %2726 = vmatpush.bf16.msra.mxu1 %v4491_v13  ;;  %v4505_v46 = vld [vmem:[#allocation6 + $0xd0] sm:$0xff]  ;;  %406 = vst [vmem:[#allocation2 + $0x48] sm:$0xff] %v382_v41  ;;  %v4488_v49 = vld [vmem:[#allocation6 + $0x48] sm:$0xff]  ;;  %v356_v57 = vld [vmem:[%s5112_s30 + $0xf8] sm:$0xff]  ;;  %v5178_v16 = vpack.c.b16 %v502_v5, %v496_v4  ;;  %v5182_v17 = vpack.c.b16 %v503_v7, %v497_v6  ;;  %p4898_p8 = pneg %p4897_p4 }
  0x4b   : > { %2755 = vmatpush.bf16.msra.mxu2 %v4499_v14  ;;  %404 = vst [vmem:[#allocation2 + $0x38] sm:$0xff] %v380_v44  ;;  %v350_v51 = vld [vmem:[%s5112_s30 + $0xc8] sm:$0xff]  ;;  %v355_v54 = vld [vmem:[%s5112_s30 + $0xf0] sm:$0xff]  ;;  %v352_v59 = vld [vmem:[%s5112_s30 + $0xd8] sm:$0xff]  ;;  %v5170_v14 = vpack.c.b16 %v500_v60, %v494_v56 }
  0x4c   : > { %2784 = vmatpush.bf16.msra.mxu3 %v4507_v15  ;;  %v4496_v52 = vld [vmem:[#allocation6 + $0x88] sm:$0xff]  ;;  %407 = vst [vmem:[#allocation2 + $0x50] sm:$0xff] %v383_v47  ;;  %v385_v55 = vpack.c.bf16 %v350_v51, %v349_v50  ;;  %v351_v58 = vld [vmem:[%s5112_s30 + $0xd0] sm:$0xff]  ;;  %v388_v63 = vpack.c.bf16 %v356_v57, %v355_v54  ;;  %v357_v0 = vld [vmem:[%s5112_s30 + $0x100] sm:$0xff]  ;;  %v5174_v15 = vpack.c.b16 %v501_v62, %v495_v61  ;;  %p4903_p10 = pnand %p4902_p2, %p4898_p8 }
  0x4d   : > { %2698 = vmatpush.bf16.msra.mxu0 %v4482_v26  ;;  %v4504_v53 = vld [vmem:[#allocation6 + $0xc8] sm:$0xff]  ;;  %v4479_v2 = vld [vmem:[#allocation6] sm:$0xff]  ;;  %v386_v10 = vpack.c.bf16 %v352_v59, %v351_v58  ;;  %v4534_v11 = vld [vmem:[#allocation6 + $0x1b8] sm:$0xff] }
  0x4e   : > { %2727 = vmatpush.bf16.msra.mxu1 %v4490_v27  ;;  %409 = vst [vmem:[#allocation2 + $0x60] sm:$0xff] %v385_v55  ;;  %v358_v1 = vld [vmem:[%s5112_s30 + $0x108] sm:$0xff]  ;;  %v4487_v3 = vld [vmem:[#allocation6 + $0x40] sm:$0xff]  ;;  %v4518_v12 = vld [vmem:[#allocation6 + $0x138] sm:$0xff] }
  0x4f   : > { %2756 = vmatpush.bf16.msra.mxu2 %v4498_v29  ;;  %v4495_v8 = vld [vmem:[#allocation6 + $0x80] sm:$0xff]  ;;  %412 = vst [vmem:[#allocation2 + $0x78] sm:$0xff] %v388_v63  ;;  %v389_v13 = vpack.c.bf16 %v358_v1, %v357_v0  ;;  %v4542_v18 = vld [vmem:[#allocation6 + $0x1f8] sm:$0xff]  ;;  %v4533_v20 = vld [vmem:[#allocation6 + $0x1b0] sm:$0xff] }
  0x50   : > { %2785 = vmatpush.bf16.msra.mxu3 %v4506_v30  ;;  %v4503_v9 = vld [vmem:[#allocation6 + $0xc0] sm:$0xff]  ;;  %v4526_v19 = vld [vmem:[#allocation6 + $0x178] sm:$0xff]  ;;  %410 = vst [vmem:[#allocation2 + $0x68] sm:$0xff] %v386_v10  ;;  %v4517_v21 = vld [vmem:[#allocation6 + $0x130] sm:$0xff] }
  0x51   : > { %2699 = vmatpush.bf16.msra.mxu0 %v4481_v32  ;;  %413 = vst [vmem:[#allocation2 + $0x80] sm:$0xff] %v389_v13  ;;  %v4541_v22 = vld [vmem:[#allocation6 + $0x1f0] sm:$0xff]  ;;  %v4532_v25 = vld [vmem:[#allocation6 + $0x1a8] sm:$0xff]  ;;  %v361_v27 = vld [vmem:[%s5112_s30 + $0x120] sm:$0xff] }
  0x52   : > { %2728 = vmatpush.bf16.msra.mxu1 %v4489_v40  ;;  %v4525_v23 = vld [vmem:[#allocation6 + $0x170] sm:$0xff]  ;;  %v4516_v26 = vld [vmem:[#allocation6 + $0x128] sm:$0xff]  ;;  %v4531_v34 = vld [vmem:[#allocation6 + $0x1a0] sm:$0xff] }
  0x53   : > { %2757 = vmatpush.bf16.msra.mxu2 %v4497_v45  ;;  %v362_v28 = vld [vmem:[%s5112_s30 + $0x128] sm:$0xff]  ;;  %v367_v32 = vld [vmem:[%s5112_s30 + $0x150] sm:$0xff]  ;;  %v4515_v35 = vld [vmem:[#allocation6 + $0x120] sm:$0xff] }
  0x54   : > { %2786 = vmatpush.bf16.msra.mxu3 %v4505_v46  ;;  %v4540_v29 = vld [vmem:[#allocation6 + $0x1e8] sm:$0xff]  ;;  %v391_v33 = vpack.c.bf16 %v362_v28, %v361_v27  ;;  %v368_v36 = vld [vmem:[%s5112_s30 + $0x158] sm:$0xff]  ;;  %v4464_v38 = vld [vmem:[#allocation2 + $0x44] sm:$0xf0] }
  0x55   : > { %2700 = vmatpush.bf16.msra.mxu0 %v4480_v48  ;;  %v4524_v30 = vld [vmem:[#allocation6 + $0x168] sm:$0xff]  ;;  %v3619_v37 = vld [vmem:[#allocation2 + $0x30] sm:$0xf]  ;;  %v394_v39 = vpack.c.bf16 %v368_v36, %v367_v32  ;;  %v363_v40 = vld [vmem:[%s5112_s30 + $0x130] sm:$0xff] }
  0x56   : > { %2729 = vmatpush.bf16.msra.mxu1 %v4488_v49  ;;  %415 = vst [vmem:[#allocation2 + $0x90] sm:$0xff] %v391_v33  ;;  %v364_v41 = vld [vmem:[%s5112_s30 + $0x138] sm:$0xff]  ;;  %v369_v42 = vld [vmem:[%s5112_s30 + $0x160] sm:$0xff]  ;;  %v3621_v44 = vld [vmem:[#allocation2 + $0x48] sm:$0xf0]  ;;  %v5196_v56 = vor.u32 %v4464_v38, %v3619_v37 }
  0x57   : > { %2758 = vmatpush.bf16.msra.mxu2 %v4496_v52  ;;  %v4461_v43 = vld [vmem:[#allocation2 + $0x34] sm:$0xf]  ;;  %v370_v45 = vld [vmem:[%s5112_s30 + $0x168] sm:$0xff]  ;;  %v392_v46 = vpack.c.bf16 %v364_v41, %v363_v40  ;;  %v3627_v47 = vld [vmem:[#allocation2 + $0x38] sm:$0xf]  ;;  %418 = vst [vmem:[#allocation2 + $0xa8] sm:$0xff] %v394_v39 }
  0x58   : > { %2787 = vmatpush.bf16.msra.mxu3 %v4504_v53  ;;  %v4465_v48 = vld [vmem:[#allocation2 + $0x4c] sm:$0xf0]  ;;  %v4539_v49 = vld [vmem:[#allocation6 + $0x1e0] sm:$0xff]  ;;  %v395_v50 = vpack.c.bf16 %v370_v45, %v369_v42  ;;  %v3629_v52 = vld [vmem:[#allocation2 + $0x50] sm:$0xf0]  ;;  %v5198_v57 = vor.u32 %v4461_v43, %v3621_v44 }
  0x59   : > { %2701 = vmatpush.bf16.msra.mxu0 %v4479_v2  ;;  %v4462_v51 = vld [vmem:[#allocation2 + $0x3c] sm:$0xf]  ;;  %416 = vst [vmem:[#allocation2 + $0x98] sm:$0xff] %v392_v46  ;;  %v4530_v54 = vld [vmem:[#allocation6 + $0x198] sm:$0xff]  ;;  %v5200_v58 = vor.u32 %v4465_v48, %v3627_v47  ;;  %v4529_v0 = vld [vmem:[#allocation6 + $0x190] sm:$0xff] }
  0x5a   : > { %2730 = vmatpush.bf16.msra.mxu1 %v4487_v3  ;;  %v4523_v53 = vld [vmem:[#allocation6 + $0x160] sm:$0xff]  ;;  %v4514_v55 = vld [vmem:[#allocation6 + $0x118] sm:$0xff]  ;;  %419 = vst [vmem:[#allocation2 + $0xb0] sm:$0xff] %v395_v50  ;;  %v5202_v59 = vor.u32 %v4462_v51, %v3629_v52  ;;  %v4513_v1 = vld [vmem:[#allocation6 + $0x110] sm:$0xff]  ;;  %v866_v31 = vrot.slane %v5198_v57, 1 }
  0x5b   : > { %2759 = vmatpush.bf16.msra.mxu2 %v4495_v8  ;;  %v4538_v61 = vld [vmem:[#allocation6 + $0x1d8] sm:$0xff]  ;;  %v4537_v2 = vld [vmem:[#allocation6 + $0x1d0] sm:$0xff]  ;;  %v4528_v4 = vld [vmem:[#allocation6 + $0x188] sm:$0xff] }
  0x5c   : > { %2788 = vmatpush.bf16.msra.mxu3 %v4503_v9  ;;  %2702 = vmatmul.bf16.vlgmr.msra.gmra.mxu0 %v5170_v14  ;;  %v4522_v63 = vld [vmem:[#allocation6 + $0x158] sm:$0xff]  ;;  %v4521_v3 = vld [vmem:[#allocation6 + $0x150] sm:$0xff]  ;;  %v4512_v6 = vld [vmem:[#allocation6 + $0x108] sm:$0xff] }
  0x5d   : > { %2810 = vmatpush.bf16.msrb.mxu0 %v4518_v12  ;;  %2731 = vmatmul.bf16.vlgmr.msra.gmra.mxu1 %v5174_v15  ;;  %v329_v8 = vld [vmem:[%s5112_s30 + $0x20] sm:$0xff]  ;;  %v330_v9 = vld [vmem:[%s5112_s30 + $0x28] sm:$0xff]  ;;  %v335_v10 = vld [vmem:[%s5112_s30 + $0x50] sm:$0xff] }
  0x5e   : > { %2760 = vmatmul.bf16.vlgmr.msra.gmra.mxu2 %v5178_v16  ;;  %2839 = vmatpush.bf16.msrb.mxu1 %v4526_v19  ;;  %v4520_v12 = vld [vmem:[#allocation6 + $0x148] sm:$0xff]  ;;  %v336_v13 = vld [vmem:[%s5112_s30 + $0x58] sm:$0xff]  ;;  %v3651_v27 = vld [vmem:[#allocation2 + $0x68] sm:$0xf] }
  0x5f   : > { %2868 = vmatpush.bf16.msrb.mxu2 %v4534_v11  ;;  %2789 = vmatmul.bf16.vlgmr.msra.gmra.mxu3 %v5182_v17  ;;  %v4536_v11 = vld [vmem:[#allocation6 + $0x1c8] sm:$0xff]  ;;  %v4535_v32 = vld [vmem:[#allocation6 + $0x1c0] sm:$0xff]  ;;  %v4566_v38 = vld [vmem:[#allocation6 + $0x2b8] sm:$0xff] }
  0x60   : > { %2897 = vmatpush.bf16.msrb.mxu3 %v4542_v18  ;;  %v5212_v18 = vpack.c.bf16 %v330_v9, %v329_v8  ;;  %v3643_v19 = vld [vmem:[#allocation2 + $0x60] sm:$0xf]  ;;  %v4519_v33 = vld [vmem:[#allocation6 + $0x140] sm:$0xff]  ;;  %v4550_v39 = vld [vmem:[#allocation6 + $0x238] sm:$0xff]  ;;  %v609_v8 = vshll.u32 %v5170_v14, 16 }
  0x61   : > { %2811 = vmatpush.bf16.msrb.mxu0 %v4517_v21  ;;  %v4467_v21 = vld [vmem:[#allocation2 + $0x64] sm:$0xf]  ;;  %v4471_v28 = vld [vmem:[#allocation2 + $0x7c] sm:$0xf0]  ;;  %v4574_v40 = vld [vmem:[#allocation6 + $0x2f8] sm:$0xff] }
  0x62   : > { %2840 = vmatpush.bf16.msrb.mxu1 %v4525_v23  ;;  %v4511_v23 = vld [vmem:[#allocation6 + $0x100] sm:$0xff]  ;;  %399 = vst [vmem:[#allocation2 + $0x10] sm:$0xff] %v5212_v18  ;;  %v5221_v36 = vor.u32 %v4471_v28, %v3651_v27  ;;  %v4558_v41 = vld [vmem:[#allocation6 + $0x278] sm:$0xff]  ;;  %v4565_v42 = vld [vmem:[#allocation6 + $0x2b0] sm:$0xff] }
  0x63   : > { %2869 = vmatpush.bf16.msrb.mxu2 %v4533_v20  ;;  %v4470_v20 = vld [vmem:[#allocation2 + $0x74] sm:$0xf0]  ;;  %v4549_v43 = vld [vmem:[#allocation6 + $0x230] sm:$0xff]  ;;  %v342_v47 = vld [vmem:[%s5112_s30 + $0x88] sm:$0xff] }
  0x64   : > { %2898 = vmatpush.bf16.msrb.mxu3 %v4541_v22  ;;  %v4527_v22 = vld [vmem:[#allocation6 + $0x180] sm:$0xff]  ;;  %v4573_v44 = vld [vmem:[#allocation6 + $0x2f0] sm:$0xff]  ;;  %v3667_v52 = vld [vmem:[#allocation2 + $0x90] sm:$0xf] }
  0x65   : > { %2812 = vmatpush.bf16.msrb.mxu0 %v4516_v26  ;;  %v3645_v26 = vld [vmem:[#allocation2 + $0x78] sm:$0xf0]  ;;  %v4557_v46 = vld [vmem:[#allocation6 + $0x270] sm:$0xff]  ;;  %v4564_v9 = vld [vmem:[#allocation6 + $0x2a8] sm:$0xff] }
  0x66   : > { %2841 = vmatpush.bf16.msrb.mxu1 %v4524_v30  ;;  %v3653_v30 = vld [vmem:[#allocation2 + $0x80] sm:$0xf0]  ;;  %v341_v45 = vld [vmem:[%s5112_s30 + $0x80] sm:$0xff]  ;;  %v347_v48 = vld [vmem:[%s5112_s30 + $0xb0] sm:$0xff] }
  0x67   : > { %2870 = vmatpush.bf16.msrb.mxu2 %v4532_v25  ;;  %v5214_v25 = vpack.c.bf16 %v336_v13, %v335_v10  ;;  %v381_v50 = vpack.c.bf16 %v342_v47, %v341_v45  ;;  %v4548_v10 = vld [vmem:[#allocation6 + $0x228] sm:$0xff]  ;;  %v359_v27 = vld [vmem:[%s5112_s30 + $0x110] sm:$0xff]  ;;  %v360_v28 = vld [vmem:[%s5112_s30 + $0x118] sm:$0xff] }
  0x68   : > { %2899 = vmatpush.bf16.msrb.mxu3 %v4540_v29  ;;  %v4468_v29 = vld [vmem:[#allocation2 + $0x6c] sm:$0xf]  ;;  %v4556_v13 = vld [vmem:[#allocation6 + $0x268] sm:$0xff]  ;;  %vm423_vm5 = vmand %vm421_vm1, %vm422_vm2 }
  0x69   : > { %2813 = vmatpush.bf16.msrb.mxu0 %v4515_v35  ;;  %v5219_v35 = vor.u32 %v4467_v21, %v3645_v26  ;;  %v5223_v37 = vor.u32 %v4468_v29, %v3653_v30  ;;  %405 = vst [vmem:[#allocation2 + $0x40] sm:$0xff] %v381_v50  ;;  %v4571_v21 = vld [vmem:[#allocation6 + $0x2e0] sm:$0xff]  ;;  %v354_v26 = vld [vmem:[%s5112_s30 + $0xe8] sm:$0xff]  ;;  %v607_v29 = vshrl.u32 %v5170_v14, 16  ;;  %v611_v30 = vrot.slane %v609_v8, 1  ;;  %vm426_vm6 = vmand %vm424_vm3, %vm425_vm4 }
  0x6a   : > { %2842 = vmatpush.bf16.msrb.mxu1 %v4523_v53  ;;  %v4473_v53 = vld [vmem:[#allocation2 + $0x94] sm:$0xf]  ;;  %v5967_v14 = vunpack.c.h.b16 %v5214_v25  ;;  %vm5275_vm7 = vmor %vm426_vm6, %vm423_vm5  ;;  %v4569_v8 = vld [vmem:[#allocation6 + $0x2d0] sm:$0xff] }
  0x6b   : > { %2871 = vmatpush.bf16.msrb.mxu2 %v4531_v34  ;;  %v5217_v34 = vor.u32 %v4470_v20, %v3643_v19  ;;  %v4563_v19 = vld [vmem:[#allocation6 + $0x2a0] sm:$0xff]  ;;  %v612_v45 = vor.u32 %v611_v30, %v607_v29 }
  0x6c   : > { %2900 = vmatpush.bf16.msrb.mxu3 %v4539_v49  ;;  %2707 = vmatmul.bf16.gmra.mxu0 %v5196_v56  ;;  %v348_v49 = vld [vmem:[%s5112_s30 + $0xb8] sm:$0xff]  ;;  %v4547_v20 = vld [vmem:[#allocation6 + $0x220] sm:$0xff] }
  0x6d   : > { %2814 = vmatpush.bf16.msrb.mxu0 %v4514_v55  ;;  %2736 = vmatmul.bf16.gmra.mxu1 %v5198_v57  ;;  %v384_v51 = vpack.c.bf16 %v348_v49, %v347_v48  ;;  %v3669_v55 = vld [vmem:[#allocation2 + $0xa8] sm:$0xf0] }
  0x6e   : > { %2765 = vmatmul.bf16.gmra.mxu2 %v5200_v58  ;;  %2843 = vmatpush.bf16.msrb.mxu1 %v4522_v63  ;;  %v4477_v63 = vld [vmem:[#allocation2 + $0xac] sm:$0xf0] }
  0x6f   : > { %2872 = vmatpush.bf16.msrb.mxu2 %v4530_v54  ;;  %2794 = vmatmul.bf16.gmra.mxu3 %v5202_v59  ;;  %408 = vst [vmem:[#allocation2 + $0x58] sm:$0xff] %v384_v51  ;;  %v4476_v54 = vld [vmem:[#allocation2 + $0xa4] sm:$0xf0] }
  0x70   : > { %2901 = vmatpush.bf16.msrb.mxu3 %v4538_v61  ;;  %v3675_v61 = vld [vmem:[#allocation2 + $0x98] sm:$0xf]  ;;  %v4463_v29 = vld [vmem:[#allocation2 + $0x44] sm:$0xf] }
  0x71   : > { %2815 = vmatpush.bf16.msrb.mxu0 %v4513_v1  ;;  %v3677_v1 = vld [vmem:[#allocation2 + $0xb0] sm:$0xf0] }
  0x72   : > { %2844 = vmatpush.bf16.msrb.mxu1 %v4521_v3  ;;  %v5235_v3 = vor.u32 %v4473_v53, %v3669_v55  ;;  %v4562_v53 = vld [vmem:[#allocation6 + $0x298] sm:$0xff] }
  0x73   : > { %2873 = vmatpush.bf16.msrb.mxu2 %v4529_v0  ;;  %v4474_v0 = vld [vmem:[#allocation2 + $0x9c] sm:$0xf]  ;;  %v4570_v55 = vld [vmem:[#allocation6 + $0x2d8] sm:$0xff] }
  0x74   : > { %2902 = vmatpush.bf16.msrb.mxu3 %v4537_v2  ;;  %v5233_v2 = vor.u32 %v4476_v54, %v3667_v52  ;;  %v428_v52 = vld [vmem:[#allocation2 + $0xc0] sm:$0x33]  ;;  %v4546_v54 = vld [vmem:[#allocation6 + $0x218] sm:$0xff] }
  0x75   : > { %2816 = vmatpush.bf16.msrb.mxu0 %v4512_v6  ;;  %v5239_v6 = vor.u32 %v4474_v0, %v3677_v1  ;;  %v4561_v0 = vld [vmem:[#allocation6 + $0x290] sm:$0xff] }
  0x76   : > { %2845 = vmatpush.bf16.msrb.mxu1 %v4520_v12  ;;  %v621_v12 = vshll.u32 %v5174_v15, 16  ;;  %v4545_v1 = vld [vmem:[#allocation6 + $0x210] sm:$0xff]  ;;  %v3637_v30 = vld [vmem:[#allocation2 + $0x58] sm:$0xf0] }
  0x77   : > { %2874 = vmatpush.bf16.msrb.mxu2 %v4528_v4  ;;  %v5237_v4 = vor.u32 %v4477_v63, %v3675_v61  ;;  %v429_v61 = vsel %vm5275_vm7, 0, %v428_v52  ;;  %v4554_v63 = vld [vmem:[#allocation6 + $0x258] sm:$0xff]  ;;  %v4559_v52 = vld [vmem:[#allocation6 + $0x280] sm:$0xff] }
  0x78   : > { %2903 = vmatpush.bf16.msrb.mxu3 %v4536_v11  ;;  %v4572_v11 = vld [vmem:[#allocation6 + $0x2e8] sm:$0xff]  ;;  %430 = vst [vmem:[#allocation2 + $0xc0] sm:$0x33] %v429_v61  ;;  %v5966_v61 = vshrl.u32 %v5217_v34, 16 }
  0x79   : > { %2817 = vmatpush.bf16.msrb.mxu0 %v4511_v23  ;;  %v353_v23 = vld [vmem:[%s5112_s30 + $0xe0] sm:$0xff] }
  0x7a   : > { %2846 = vmatpush.bf16.msrb.mxu1 %v4519_v33  ;;  %v390_v33 = vpack.c.bf16 %v360_v28, %v359_v27  ;;  %v3635_v27 = vld [vmem:[#allocation2 + $0x40] sm:$0xf]  ;;  %v4466_v28 = vld [vmem:[#allocation2 + $0x54] sm:$0xf0] }
  0x7b   : > { %2875 = vmatpush.bf16.msrb.mxu2 %v4527_v22  ;;  %v4555_v22 = vld [vmem:[#allocation6 + $0x260] sm:$0xff] }
  0x7c   : > { %2904 = vmatpush.bf16.msrb.mxu3 %v4535_v32  ;;  %2712 = vmatmul.bf16.gmra.mxu0 %v5217_v34  ;;  %v387_v32 = vpack.c.bf16 %v354_v26, %v353_v23  ;;  %414 = vst [vmem:[#allocation2 + $0x88] sm:$0xff] %v390_v33  ;;  %v5969_v23 = vshrl.u32 %v5198_v57, 16  ;;  %v5955_v26 = vshll.u32 %v5219_v35, 16 }
  0x7d   : > { %2741 = vmatmul.bf16.gmra.mxu1 %v5219_v35  ;;  %2926 = vmatpush.bf16.msra.mxu0 %v4550_v39  ;;  %v619_v39 = vshrl.u32 %v5174_v15, 16 }
  0x7e   : > { %2770 = vmatmul.bf16.gmra.mxu2 %v5221_v36  ;;  %2955 = vmatpush.bf16.msra.mxu1 %v4558_v41  ;;  %v5972_v41 = vshll.u32 %v5198_v57, 16  ;;  %411 = vst [vmem:[#allocation2 + $0x70] sm:$0xff] %v387_v32 }
  0x7f   : > { %2799 = vmatmul.bf16.gmra.mxu3 %v5223_v37  ;;  %2984 = vmatpush.bf16.msra.mxu2 %v4566_v38  ;;  %v614_v38 = vshll.u32 %v5196_v56, 16 }
  0x80   : > { %3013 = vmatpush.bf16.msra.mxu3 %v4574_v40  ;;  %v623_v40 = vrot.slane %v621_v12, 1  ;;  %v628_v47 = vrot.slane %v5972_v41, 1  ;;  %v371_v12 = vld [vmem:[%s5112_s30 + $0x170] sm:$0xff] }
  0x81   : > { %2927 = vmatpush.bf16.msra.mxu0 %v4549_v43  ;;  %v5968_v43 = vunpack.c.l.b16 %v5214_v25  ;;  %v616_v15 = vrot.slane %v614_v38, 1 }
  0x82   : > { %2956 = vmatpush.bf16.msra.mxu1 %v4557_v46  ;;  %v624_v46 = vor.u32 %v623_v40, %v619_v39  ;;  %v688_v39 = vor.u32 %v5969_v23, %v628_v47  ;;  %v692_v40 = vrot.slane %v5955_v26, 1  ;;  %v4575_v26 = vld [vmem:[#allocation6 + $0x300] sm:$0xff] }
  0x83   : > { %2985 = vmatpush.bf16.msra.mxu2 %v4565_v42  ;;  %v498_v42 = vunpack.c.l.b16 %v5212_v18  ;;  %v617_v49 = vsel %vm605_vm0, %v612_v45, %v616_v15 }
  0x84   : > { %3014 = vmatpush.bf16.msra.mxu3 %v4573_v44  ;;  %v499_v44 = vunpack.c.h.b16 %v5212_v18  ;;  %v629_v50 = vsel %vm605_vm0, %v624_v46, %v628_v47  ;;  %v693_v46 = vsel %vm605_vm0, %v688_v39, %v692_v40  ;;  %v4568_v47 = vld [vmem:[#allocation6 + $0x2c8] sm:$0xff] }
  0x85   : > { %2928 = vmatpush.bf16.msra.mxu0 %v4548_v10  ;;  %v5265_v48 = vpack.c.b16 %v5968_v43, %v498_v42  ;;  %v365_v10 = vld [vmem:[%s5112_s30 + $0x140] sm:$0xff]  ;;  %v5297_v42 = vor.u32 %v4466_v28, %v3635_v27  ;;  %v461_v27 = vld [vmem:[#allocation2 + $0xc0] sm:$0x11] }
  0x86   : > { %2957 = vmatpush.bf16.msra.mxu1 %v4556_v13  ;;  %v5269_v18 = vpack.c.b16 %v5967_v14, %v499_v44  ;;  %v372_v13 = vld [vmem:[%s5112_s30 + $0x178] sm:$0xff]  ;;  %v5299_v44 = vor.u32 %v4463_v29, %v3637_v30  ;;  %v593_v39 = vunpack.c.l.b16 %v461_v27  ;;  %v4637_v14 = vld [vmem:[#allocation6 + $0x4f0] sm:$0xff] }
  0x87   : > { %2986 = vmatpush.bf16.msra.mxu2 %v4564_v9  ;;  %v4553_v9 = vld [vmem:[#allocation6 + $0x250] sm:$0xff]  ;;  %v5951_v51 = vshrl.u32 %v5297_v42, 16 }
  0x88   : > { %3015 = vmatpush.bf16.msra.mxu3 %v4572_v11  ;;  %v366_v11 = vld [vmem:[%s5112_s30 + $0x148] sm:$0xff] }
  0x89   : > { %2929 = vmatpush.bf16.msra.mxu0 %v4547_v20  ;;  %v396_v20 = vpack.c.bf16 %v372_v13, %v371_v12 }
  0x8a   : > { %2958 = vmatpush.bf16.msra.mxu1 %v4555_v22  ;;  %v5965_v22 = vshll.u32 %v5217_v34, 16 }
  0x8b   : > { %2987 = vmatpush.bf16.msra.mxu2 %v4563_v19  ;;  %v393_v19 = vpack.c.bf16 %v366_v11, %v365_v10  ;;  %420 = vst [vmem:[#allocation2 + $0xb8] sm:$0xff] %v396_v20  ;;  %v4469_v10 = vld [vmem:[#allocation2 + $0x74] sm:$0xf]  ;;  %v3661_v11 = vld [vmem:[#allocation2 + $0x88] sm:$0xf0] }
  0x8c   : > { %2717 = vmatmul.bf16.gmra.mxu0 %v5233_v2  ;;  %3016 = vmatpush.bf16.msra.mxu3 %v4571_v21  ;;  %v5970_v21 = vshrl.u32 %v5196_v56, 16  ;;  %v684_v33 = vrot.slane %v5965_v22, 1  ;;  %v5319_v29 = vor.u32 %v4469_v10, %v3661_v11  ;;  %v4605_v10 = vld [vmem:[#allocation6 + $0x3f0] sm:$0xff] }
  0x8d   : > { %2746 = vmatmul.bf16.gmra.mxu1 %v5235_v3  ;;  %2930 = vmatpush.bf16.msra.mxu0 %v4546_v54  ;;  %417 = vst [vmem:[#allocation2 + $0xa0] sm:$0xff] %v393_v19  ;;  %v4567_v54 = vld [vmem:[#allocation6 + $0x2c0] sm:$0xff] }
  0x8e   : > { %2775 = vmatmul.bf16.gmra.mxu2 %v5237_v4  ;;  %2959 = vmatpush.bf16.msra.mxu1 %v4554_v63  ;;  %v680_v32 = vor.u32 %v5970_v21, %v616_v15  ;;  %v4560_v15 = vld [vmem:[#allocation6 + $0x288] sm:$0xff]  ;;  %v5945_v63 = vshll.u32 %v5233_v2, 16  ;;  %v728_v12 = vor.u32 %v5966_v61, %v684_v33 }
  0x8f   : > { %2804 = vmatmul.bf16.gmra.mxu3 %v5239_v6  ;;  %2988 = vmatpush.bf16.msra.mxu2 %v4562_v53  ;;  %v4543_v53 = vld [vmem:[#allocation6 + $0x200] sm:$0xff] }
  0x90   : > { %3017 = vmatpush.bf16.msra.mxu3 %v4570_v55  ;;  %v685_v45 = vsel %vm605_vm0, %v680_v32, %v684_v33  ;;  %v4551_v55 = vld [vmem:[#allocation6 + $0x240] sm:$0xff]  ;;  %v732_v13 = vrot.slane %v5945_v63, 1  ;;  %v594_v33 = vunpack.c.h.b16 %v461_v27 }
  0x91   : > { %2931 = vmatpush.bf16.msra.mxu0 %v4545_v1  ;;  %v5939_v1 = vshll.u32 %v5235_v3, 16 }
  0x92   : > { %2960 = vmatpush.bf16.msra.mxu1 %v4553_v9  ;;  %v4472_v9 = vld [vmem:[#allocation2 + $0x84] sm:$0xf0]  ;;  %v733_v30 = vsel %vm605_vm0, %v728_v12, %v732_v13  ;;  %v4478_v11 = vld [vmem:[#allocation2 + $0xb4] sm:$0xf0] }
  0x93   : > { %2989 = vmatpush.bf16.msra.mxu2 %v4561_v0  ;;  %v5964_v0 = vshrl.u32 %v5219_v35, 16  ;;  %v740_v20 = vrot.slane %v5939_v1, 1  ;;  %v633_v1 = vshll.u32 %v5178_v16, 16 }
  0x94   : > { %3018 = vmatpush.bf16.msra.mxu3 %v4569_v8  ;;  %v3659_v8 = vld [vmem:[#allocation2 + $0x70] sm:$0xf]  ;;  %v4475_v12 = vld [vmem:[#allocation2 + $0xa4] sm:$0xf] }
  0x95   : > { %v736_v19 = vor.u32 %v5964_v0, %v692_v40  ;;  %v5317_v28 = vor.u32 %v4472_v9, %v3659_v8  ;;  %v4598_v40 = vld [vmem:[#allocation6 + $0x3b8] sm:$0xff]  ;;  %v4597_v8 = vld [vmem:[#allocation6 + $0x3b0] sm:$0xff] }
  0x96   : > { %v4581_v9 = vld [vmem:[#allocation6 + $0x330] sm:$0xff] }
  0x97   : > { %2990 = vmatpush.bf16.msra.mxu2 %v4560_v15  ;;  %v741_v32 = vsel %vm605_vm0, %v736_v19, %v740_v20  ;;  %v5325_v15 = vpack.c.b16 %v593_v39, %v593_v39  ;;  %v3685_v19 = vld [vmem:[#allocation2 + $0xb8] sm:$0xf0] }
  0x98   : > { %3019 = vmatpush.bf16.msra.mxu3 %v4568_v47  ;;  %v5946_v47 = vshrl.u32 %v5233_v2, 16 }
  0x9a   : > { %v776_v27 = vor.u32 %v5946_v47, %v732_v13  ;;  %v645_v13 = vshll.u32 %v5182_v17, 16 }
  0x9b   : > { %2991 = vmatpush.bf16.msra.mxu2 %v4559_v52  ;;  %v5940_v52 = vshrl.u32 %v5235_v3, 16 }
  0x9c   : > { %2818 = vmatmul.bf16.vlgmr.msrb.gmra.mxu0 %v5265_v48  ;;  %3020 = vmatpush.bf16.msra.mxu3 %v4567_v54  ;;  %v3683_v54 = vld [vmem:[#allocation2 + $0xa0] sm:$0xf] }
  0x9d   : > { %2847 = vmatmul.bf16.vlgmr.msrb.gmra.mxu1 %v5269_v18 }
  0x9e   : > { %2876 = vmatmul.bf16.vlgmr.msrb.gmra.mxu2 %v617_v49  ;;  %v4544_v49 = vld [vmem:[#allocation6 + $0x208] sm:$0xff] }
  0x9f   : > { %2905 = vmatmul.bf16.vlgmr.msrb.gmra.mxu3 %v629_v50  ;;  %v4552_v50 = vld [vmem:[#allocation6 + $0x248] sm:$0xff]  ;;  %2932 = vmatpush.bf16.msra.mxu0 %v4544_v49  ;;  %v5327_v49 = vpack.c.b16 %v594_v33, %v594_v33  ;;  %v5337_v33 = vor.u32 %v4478_v11, %v3683_v54  ;;  %v643_v11 = vshrl.u32 %v5182_v17, 16  ;;  %v4603_v17 = vld [vmem:[#allocation6 + $0x3e0] sm:$0xff] }
  0xa0   : > { %2961 = vmatpush.bf16.msra.mxu1 %v4552_v50  ;;  %3100 = vmatpush.bf16.msrb.mxu2 %v4598_v40  ;;  %v778_v50 = vshll.u32 %v5325_v15, 16  ;;  %v5339_v40 = vor.u32 %v4475_v12, %v3685_v19  ;;  %v4604_v54 = vld [vmem:[#allocation6 + $0x3e8] sm:$0xff]  ;;  %v647_v12 = vrot.slane %v645_v13, 1  ;;  %v655_v19 = vshrl.u32 %v5265_v48, 16 }
  0xa3   : > { %2933 = vmatpush.bf16.msra.mxu0 %v4543_v53  ;;  %v786_v53 = vshll.u32 %v5327_v49, 16 }
  0xa4   : > { %2962 = vmatpush.bf16.msra.mxu1 %v4551_v55  ;;  %v4590_v55 = vld [vmem:[#allocation6 + $0x378] sm:$0xff]  ;;  %3101 = vmatpush.bf16.msrb.mxu2 %v4597_v8  ;;  %v669_v8 = vshll.u32 %v5269_v18, 16 }
  0xa5   : > { %v788_v39 = vrot.slane %v786_v53, 1  ;;  %v4580_v53 = vld [vmem:[#allocation6 + $0x328] sm:$0xff] }
  0xa8   : > { %3071 = vmatpush.bf16.msrb.mxu1 %v4590_v55  ;;  %v4589_v55 = vld [vmem:[#allocation6 + $0x370] sm:$0xff] }
  0xac   : > { %2823 = vmatmul.bf16.gmra.mxu0 %v5297_v42  ;;  %3072 = vmatpush.bf16.msrb.mxu1 %v4589_v55  ;;  %v5944_v55 = vshll.u32 %v5299_v44, 16 }
  0xad   : > { %2852 = vmatmul.bf16.gmra.mxu1 %v5299_v44 }
  0xae   : > { %2881 = vmatmul.bf16.gmra.mxu2 %v685_v45  ;;  %v4582_v45 = vld [vmem:[#allocation6 + $0x338] sm:$0xff] }
  0xaf   : > { %2910 = vmatmul.bf16.gmra.mxu3 %v693_v46  ;;  %v4606_v46 = vld [vmem:[#allocation6 + $0x3f8] sm:$0xff]  ;;  %3042 = vmatpush.bf16.msrb.mxu0 %v4582_v45 }
  0xb0   : > { %3129 = vmatpush.bf16.msrb.mxu3 %v4606_v46 }
  0xb3   : > { %3043 = vmatpush.bf16.msrb.mxu0 %v4581_v9  ;;  %v631_v9 = vshrl.u32 %v5178_v16, 16  ;;  %v4588_v16 = vld [vmem:[#allocation6 + $0x368] sm:$0xff] }
  0xb4   : > { %3130 = vmatpush.bf16.msrb.mxu3 %v4605_v10  ;;  %v635_v10 = vrot.slane %v633_v1, 1  ;;  %v4595_v1 = vld [vmem:[#allocation6 + $0x3a0] sm:$0xff]  ;;  %3073 = vmatpush.bf16.msrb.mxu1 %v4588_v16 }
  0xb6   : > { %v636_v13 = vor.u32 %v635_v10, %v631_v9  ;;  %v676_v9 = vrot.slane %v5944_v55, 1 }
  0xb7   : > { %3044 = vmatpush.bf16.msrb.mxu0 %v4580_v53 }
  0xb8   : > { %3131 = vmatpush.bf16.msrb.mxu3 %v4604_v54 }
  0xbc   : > { %2828 = vmatmul.bf16.gmra.mxu0 %v5317_v28  ;;  %3132 = vmatpush.bf16.msrb.mxu3 %v4603_v17  ;;  %v4578_v17 = vld [vmem:[#allocation6 + $0x318] sm:$0xff] }
  0xbd   : > { %2857 = vmatmul.bf16.gmra.mxu1 %v5319_v29 }
  0xbe   : > { %2886 = vmatmul.bf16.gmra.mxu2 %v733_v30  ;;  %v780_v30 = vrot.slane %v778_v50, 1  ;;  %v4596_v50 = vld [vmem:[#allocation6 + $0x3a8] sm:$0xff] }
  0xbf   : > { %2915 = vmatmul.bf16.gmra.mxu3 %v741_v32  ;;  %v784_v32 = vor.u32 %v5940_v52, %v740_v20  ;;  %v657_v20 = vshll.u32 %v5265_v48, 16  ;;  %3102 = vmatpush.bf16.msrb.mxu2 %v4596_v50  ;;  %v4579_v50 = vld [vmem:[#allocation6 + $0x320] sm:$0xff] }
  0xc0   : > { %v781_v45 = vsel %vm605_vm0, %v776_v27, %v780_v30  ;;  %v5943_v30 = vshll.u32 %v5200_v58, 16  ;;  %3045 = vmatpush.bf16.msrb.mxu0 %v4579_v50  ;;  %v4594_v50 = vld [vmem:[#allocation6 + $0x398] sm:$0xff] }
  0xc1   : > { %v789_v46 = vsel %vm605_vm0, %v784_v32, %v788_v39  ;;  %v659_v27 = vrot.slane %v657_v20, 1  ;;  %v5941_v32 = vshll.u32 %v5202_v59, 16  ;;  %v667_v39 = vshrl.u32 %v5269_v18, 16  ;;  %v5364_v18 = vld [vmem:[%s5934_s2] ss:$0 sm:$0xff] }
  0xc2   : > { %v640_v48 = vrot.slane %v5943_v30, 1  ;;  %v648_v20 = vor.u32 %v647_v12, %v643_v11 }
  0xc3   : > { %v652_v53 = vrot.slane %v5941_v32, 1  ;;  %v660_v54 = vor.u32 %v659_v27, %v655_v19  ;;  %3103 = vmatpush.bf16.msrb.mxu2 %v4595_v1 }
  0xc4   : > { %v641_v12 = vsel %vm605_vm0, %v636_v13, %v640_v48  ;;  %v4602_v13 = vld [vmem:[#allocation6 + $0x3d8] sm:$0xff]  ;;  %3046 = vmatpush.bf16.msrb.mxu0 %v4578_v17 }
  0xc5   : > { %v653_v16 = vsel %vm605_vm0, %v648_v20, %v652_v53  ;;  %3133 = vmatpush.bf16.msrb.mxu3 %v4602_v13  ;;  %v4586_v17 = vld [vmem:[#allocation6 + $0x358] sm:$0xff]  ;;  %v4593_v13 = vld [vmem:[#allocation6 + $0x390] sm:$0xff] }
  0xc7   : > { %3104 = vmatpush.bf16.msrb.mxu2 %v4594_v50 }
  0xcb   : > { %3105 = vmatpush.bf16.msrb.mxu2 %v4593_v13  ;;  %v4585_v13 = vld [vmem:[#allocation6 + $0x350] sm:$0xff] }
  0xcc   : > { %2833 = vmatmul.bf16.gmra.mxu0 %v5337_v33 }
  0xcd   : > { %2862 = vmatmul.bf16.gmra.mxu1 %v5339_v40 }
  0xce   : > { %2891 = vmatmul.bf16.gmra.mxu2 %v781_v45  ;;  %v671_v45 = vrot.slane %v669_v8, 1 }
  0xcf   : > { %2920 = vmatmul.bf16.gmra.mxu3 %v789_v46  ;;  %v5942_v46 = vshll.u32 %v5297_v42, 16 }
  0xd0   : > { %v672_v52 = vor.u32 %v671_v45, %v667_v39  ;;  %v434_v39 = vld [vmem:[#allocation2 + $0xd0] sm:$0x33]  ;;  %v4587_v45 = vld [vmem:[#allocation6 + $0x360] sm:$0xff] }
  0xd1   : > { %v664_v8 = vrot.slane %v5942_v46, 1  ;;  %v431_v46 = vld [vmem:[#allocation2 + $0xc8] sm:$0x33]  ;;  %v435_v20 = vsel %vm5275_vm7, 0, %v434_v39  ;;  %3074 = vmatpush.bf16.msrb.mxu1 %v4587_v45  ;;  %v5950_v39 = vshll.u32 %v5317_v28, 16  ;;  %v5952_v45 = vshrl.u32 %v5299_v44, 16 }
  0xd2   : > { %v677_v27 = vsel %vm605_vm0, %v672_v52, %v676_v9  ;;  %v432_v1 = vsel %vm5275_vm7, 0, %v431_v46  ;;  %436 = vst [vmem:[#allocation2 + $0xd0] sm:$0x33] %v435_v20  ;;  %v4577_v20 = vld [vmem:[#allocation6 + $0x310] sm:$0xff] }
  0xd3   : > { %v665_v19 = vsel %vm605_vm0, %v660_v54, %v664_v8  ;;  %433 = vst [vmem:[#allocation2 + $0xc8] sm:$0x33] %v432_v1  ;;  %v5954_v54 = vshrl.u32 %v5200_v58, 16  ;;  %v5953_v1 = vshll.u32 %v5319_v29, 16  ;;  %3047 = vmatpush.bf16.msrb.mxu0 %v4577_v20 }
  0xd5   : > { %v696_v55 = vor.u32 %v5954_v54, %v640_v48  ;;  %3075 = vmatpush.bf16.msrb.mxu1 %v4586_v17  ;;  %v724_v48 = vrot.slane %v5953_v1, 1  ;;  %v4584_v1 = vld [vmem:[#allocation6 + $0x348] sm:$0xff]  ;;  %v4591_v54 = vld [vmem:[#allocation6 + $0x380] sm:$0xff] }
  0xd9   : > { %v2703_v10 = vpop.f32.mrf.mxu0  ;;  %3076 = vmatpush.bf16.msrb.mxu1 %v4585_v13  ;;  %v5962_v13 = vshll.u32 %v5339_v40, 16 }
  0xda   : > { %v2732_v11 = vpop.f32.mrf.mxu1  ;;  %v2704_v32 = vadd.f32 %v5364_v18, %v2703_v10  ;;  %v5947_v10 = vshll.u32 %v5221_v36, 16 }
  0xdc   : > { %v2733_v30 = vadd.f32 %v2732_v11, %v2704_v32  ;;  %2934 = vmatmul.bf16.vlgmr.msra.gmra.mxu0 %v641_v12  ;;  %v700_v63 = vrot.slane %v5947_v10, 1 }
  0xdd   : > { %2963 = vmatmul.bf16.vlgmr.msra.gmra.mxu1 %v653_v16  ;;  %v5949_v16 = vshrl.u32 %v5202_v59, 16 }
  0xde   : > { %2992 = vmatmul.bf16.vlgmr.msra.gmra.mxu2 %v665_v19  ;;  %v5948_v19 = vshll.u32 %v5223_v37, 16  ;;  %3077 = vmatpush.bf16.msrb.mxu1 %v4584_v1 }
  0xdf   : > { %3021 = vmatmul.bf16.vlgmr.msra.gmra.mxu3 %v677_v27 }
  0xe0   : > { %v708_v47 = vrot.slane %v5948_v19, 1 }
  0xe1   : > { %v2761_v52 = vpop.f32.mrf.mxu2  ;;  %v2705_v11 = vpop.f32.mrf.mxu0 }
  0xe2   : > { %v2790_v32 = vpop.f32.mrf.mxu3  ;;  %v2762_v46 = vadd.f32 %v2761_v52, %v2733_v30  ;;  %v2734_v12 = vpop.f32.mrf.mxu1  ;;  %v2706_v27 = vadd.f32 %v5364_v18, %v2705_v11  ;;  %v4601_v52 = vld [vmem:[#allocation6 + $0x3d0] sm:$0xff]  ;;  %v704_v11 = vor.u32 %v5949_v16, %v652_v53  ;;  %v701_v16 = vsel %vm605_vm0, %v696_v55, %v700_v63 }
  0xe3   : > { %3134 = vmatpush.bf16.msrb.mxu3 %v4601_v52  ;;  %v4576_v52 = vld [vmem:[#allocation6 + $0x308] sm:$0xff]  ;;  %v5963_v55 = vshrl.u32 %v5221_v36, 16 }
  0xe4   : > { %v5388_v50 = vadd.f32 %v2790_v32, %v2762_v46  ;;  %v2735_v30 = vadd.f32 %v2734_v12, %v2706_v27  ;;  %v712_v32 = vor.u32 %v5951_v51, %v664_v8  ;;  %v716_v46 = vrot.slane %v5950_v39, 1  ;;  %3048 = vmatpush.bf16.msrb.mxu0 %v4576_v52 }
  0xe5   : > { %v720_v12 = vor.u32 %v5952_v45, %v676_v9  ;;  %v709_v8 = vsel %vm605_vm0, %v704_v11, %v708_v47  ;;  %v744_v52 = vor.u32 %v5963_v55, %v700_v63 }
  0xe6   : > { %v717_v51 = vsel %vm605_vm0, %v712_v32, %v716_v46  ;;  %v5957_v32 = vshll.u32 %v5237_v4, 16 }
  0xe7   : > { %v725_v9 = vsel %vm605_vm0, %v720_v12, %v724_v48 }
  0xe8   : > { %3049 = vmatpush.bf16.msrb.mxu0 %v4575_v26 }
  0xe9   : > { %v2763_v53 = vpop.f32.mrf.mxu2  ;;  %v2708_v19 = vpop.f32.mrf.mxu0 }
  0xea   : > { %v2792_v27 = vpop.f32.mrf.mxu3  ;;  %v2764_v10 = vadd.f32 %v2763_v53, %v2735_v30  ;;  %v2737_v17 = vpop.f32.mrf.mxu1  ;;  %v2709_v39 = vadd.f32 %v5364_v18, %v2708_v19  ;;  %v4592_v30 = vld [vmem:[#allocation6 + $0x388] sm:$0xff] }
  0xeb   : > { %v4600_v53 = vld [vmem:[#allocation6 + $0x3c8] sm:$0xff]  ;;  %3106 = vmatpush.bf16.msrb.mxu2 %v4592_v30 }
  0xec   : > { %v5411_v45 = vadd.f32 %v2792_v27, %v2764_v10  ;;  %v2738_v20 = vadd.f32 %v2737_v17, %v2709_v39  ;;  %2939 = vmatmul.bf16.gmra.mxu0 %v701_v16  ;;  %v5958_v10 = vshrl.u32 %v5223_v37, 16  ;;  %v5956_v39 = vshll.u32 %v5239_v6, 16  ;;  %3135 = vmatpush.bf16.msrb.mxu3 %v4600_v53 }
  0xed   : > { %2968 = vmatmul.bf16.gmra.mxu1 %v709_v8  ;;  %v5960_v27 = vshrl.u32 %v5317_v28, 16  ;;  %v5959_v17 = vshll.u32 %v5337_v33, 16 }
  0xee   : > { %2997 = vmatmul.bf16.gmra.mxu2 %v717_v51 }
  0xef   : > { %3026 = vmatmul.bf16.gmra.mxu3 %v725_v9  ;;  %v5961_v9 = vshrl.u32 %v5319_v29, 16  ;;  %v5440_v63 = vrot.slane %v5959_v17, 1  ;;  %3107 = vmatpush.bf16.msrb.mxu2 %v4591_v54  ;;  %v4583_v17 = vld [vmem:[#allocation6 + $0x340] sm:$0xff] }
  0xf0   : > { %3078 = vmatpush.bf16.msrb.mxu1 %v4583_v17  ;;  %v5973_v17 = vshrl.u32 %v5239_v6, 16 }
  0xf1   : > { %v2766_v19 = vpop.f32.mrf.mxu2  ;;  %v2710_v51 = vpop.f32.mrf.mxu0 }
  0xf2   : > { %v2795_v11 = vpop.f32.mrf.mxu3  ;;  %v2767_v16 = vadd.f32 %v2766_v19, %v2738_v20  ;;  %v2739_v12 = vpop.f32.mrf.mxu1  ;;  %v2711_v8 = vadd.f32 %v5364_v18, %v2710_v51  ;;  %v5428_v20 = vrot.slane %v5957_v32, 1  ;;  %v752_v19 = vor.u32 %v5958_v10, %v708_v47 }
  0xf3   : > { %v5434_v51 = vrot.slane %v5956_v39, 1  ;;  %v5446_v47 = vrot.slane %v5962_v13, 1  ;;  %v463_v39 = vld [vmem:[#allocation2 + $0xd0] sm:$0x11] }
  0xf4   : > { %v5422_v30 = vadd.f32 %v2795_v11, %v2767_v16  ;;  %v2740_v53 = vadd.f32 %v2739_v12, %v2711_v8  ;;  %v4599_v11 = vld [vmem:[#allocation6 + $0x3c0] sm:$0xff]  ;;  %v760_v16 = vor.u32 %v5960_v27, %v716_v46  ;;  %v768_v12 = vor.u32 %v5961_v9, %v724_v48  ;;  %v462_v8 = vld [vmem:[#allocation2 + $0xc8] sm:$0x11] }
  0xf5   : > { %3136 = vmatpush.bf16.msrb.mxu3 %v4599_v11  ;;  %v749_v46 = vsel %vm605_vm0, %v744_v52, %v5428_v20  ;;  %v757_v1 = vsel %vm605_vm0, %v752_v19, %v5434_v51  ;;  %v595_v55 = vunpack.c.l.b16 %v462_v8  ;;  %v596_v54 = vunpack.c.h.b16 %v462_v8  ;;  %v4614_v8 = vld [vmem:[#allocation6 + $0x438] sm:$0xff] }
  0xf6   : > { %v765_v13 = vsel %vm605_vm0, %v760_v16, %v5440_v63  ;;  %v773_v11 = vsel %vm605_vm0, %v768_v12, %v5446_v47  ;;  %v597_v0 = vunpack.c.l.b16 %v463_v39  ;;  %v598_v22 = vunpack.c.h.b16 %v463_v39  ;;  %v4630_v16 = vld [vmem:[#allocation6 + $0x4b8] sm:$0xff]  ;;  %3158 = vmatpush.bf16.msra.mxu0 %v4614_v8 }
  0xf7   : > { %3216 = vmatpush.bf16.msra.mxu2 %v4630_v16  ;;  %v4622_v8 = vld [vmem:[#allocation6 + $0x478] sm:$0xff] }
  0xf8   : > { %v5463_v61 = vpack.c.b16 %v597_v0, %v597_v0  ;;  %v5465_v12 = vpack.c.b16 %v598_v22, %v598_v22  ;;  %v806_v0 = vshrl.u32 %v5337_v33, 16  ;;  %3187 = vmatpush.bf16.msra.mxu1 %v4622_v8 }
  0xf9   : > { %v2768_v32 = vpop.f32.mrf.mxu2  ;;  %v2713_v48 = vpop.f32.mrf.mxu0 }
  0xfa   : > { %v2797_v10 = vpop.f32.mrf.mxu3  ;;  %v2769_v27 = vadd.f32 %v2768_v32, %v2740_v53  ;;  %v2742_v9 = vpop.f32.mrf.mxu1  ;;  %v2714_v26 = vadd.f32 %v5364_v18, %v2713_v48  ;;  %v5459_v32 = vpack.c.b16 %v595_v55, %v595_v55  ;;  %v5461_v53 = vpack.c.b16 %v596_v54, %v596_v54  ;;  %v4638_v48 = vld [vmem:[#allocation6 + $0x4f8] sm:$0xff] }
  0xfb   : > { %3245 = vmatpush.bf16.msra.mxu3 %v4638_v48  ;;  %v810_v54 = vshll.u32 %v5463_v61, 16  ;;  %v4629_v48 = vld [vmem:[#allocation6 + $0x4b0] sm:$0xff] }
  0xfc   : > { %v5457_v52 = vadd.f32 %v2797_v10, %v2769_v27  ;;  %v2743_v19 = vadd.f32 %v2742_v9, %v2714_v26  ;;  %2944 = vmatmul.bf16.gmra.mxu0 %v749_v46  ;;  %v5971_v27 = vshrl.u32 %v5237_v4, 16  ;;  %v794_v46 = vshll.u32 %v5459_v32, 16  ;;  %3217 = vmatpush.bf16.msra.mxu2 %v4629_v48 }
  0xfd   : > { %2973 = vmatmul.bf16.gmra.mxu1 %v757_v1  ;;  %v802_v1 = vshll.u32 %v5461_v53, 16  ;;  %v5974_v26 = vshrl.u32 %v5339_v40, 16 }
  0xfe   : > { %3002 = vmatmul.bf16.gmra.mxu2 %v765_v13  ;;  %v792_v43 = vor.u32 %v5971_v27, %v5428_v20  ;;  %v796_v23 = vrot.slane %v794_v46, 1  ;;  %v464_v27 = vld [vmem:[#allocation2] sm:$0xee] }
  0xff   : > { %3031 = vmatmul.bf16.gmra.mxu3 %v773_v11  ;;  %v818_v11 = vshll.u32 %v5465_v12, 16  ;;  %v804_v21 = vrot.slane %v802_v1, 1 }
 0x100   : > { %3246 = vmatpush.bf16.msra.mxu3 %v4637_v14  ;;  %v797_v8 = vsel %vm605_vm0, %v792_v43, %v796_v23  ;;  %v4621_v14 = vld [vmem:[#allocation6 + $0x470] sm:$0xff]  ;;  %v4628_v43 = vld [vmem:[#allocation6 + $0x4a8] sm:$0xff] }
 0x101   : > { %v2771_v10 = vpop.f32.mrf.mxu2  ;;  %v2715_v9 = vpop.f32.mrf.mxu0  ;;  %v4612_v23 = vld [vmem:[#allocation6 + $0x428] sm:$0xff]  ;;  %3188 = vmatpush.bf16.msra.mxu1 %v4621_v14  ;;  %3218 = vmatpush.bf16.msra.mxu2 %v4628_v43  ;;  %v872_v14 = vrot.slane %v5202_v59, 1 }
 0x102   : > { %v2800_v39 = vpop.f32.mrf.mxu3  ;;  %v2772_v55 = vadd.f32 %v2771_v10, %v2743_v19  ;;  %v2744_v13 = vpop.f32.mrf.mxu1  ;;  %v2716_v22 = vadd.f32 %v5364_v18, %v2715_v9  ;;  %v4613_v10 = vld [vmem:[#allocation6 + $0x430] sm:$0xff]  ;;  %v800_v9 = vor.u32 %v5973_v17, %v5434_v51 }
 0x103   : > { %3159 = vmatpush.bf16.msra.mxu0 %v4613_v10  ;;  %v849_v10 = vunpack.c.l.b16 %v464_v27 }
 0x104   : > { %v5476_v16 = vadd.f32 %v2800_v39, %v2772_v55  ;;  %v2745_v19 = vadd.f32 %v2744_v13, %v2716_v22  ;;  %v808_v39 = vor.u32 %v806_v0, %v5440_v63  ;;  %v812_v55 = vrot.slane %v810_v54, 1 }
 0x105   : > { %v816_v13 = vor.u32 %v5974_v26, %v5446_v47  ;;  %v820_v22 = vrot.slane %v818_v11, 1  ;;  %v805_v17 = vsel %vm605_vm0, %v800_v9, %v804_v21  ;;  %v465_v11 = vld [vmem:[#allocation2 + $0x8] sm:$0xee]  ;;  %v4636_v21 = vld [vmem:[#allocation6 + $0x4e8] sm:$0xff] }
 0x106   : > { %v813_v54 = vsel %vm605_vm0, %v808_v39, %v812_v55  ;;  %v851_v9 = vunpack.c.l.b16 %v465_v11  ;;  %3247 = vmatpush.bf16.msra.mxu3 %v4636_v21 }
 0x107   : > { %v821_v47 = vsel %vm605_vm0, %v816_v13, %v820_v22  ;;  %3160 = vmatpush.bf16.msra.mxu0 %v4612_v23 }
 0x109   : > { %v2773_v20 = vpop.f32.mrf.mxu2  ;;  %v2718_v51 = vpop.f32.mrf.mxu0 }
 0x10a   : > { %v2802_v46 = vpop.f32.mrf.mxu3  ;;  %v2774_v41 = vadd.f32 %v2773_v20, %v2745_v19  ;;  %v2747_v1 = vpop.f32.mrf.mxu1  ;;  %v2719_v63 = vadd.f32 %v5364_v18, %v2718_v51  ;;  %v850_v19 = vunpack.c.h.b16 %v464_v27  ;;  %v852_v20 = vunpack.c.h.b16 %v465_v11 }
 0x10c   : > { %v5495_v48 = vadd.f32 %v2802_v46, %v2774_v41  ;;  %v2748_v26 = vadd.f32 %v2747_v1, %v2719_v63  ;;  %2949 = vmatmul.bf16.gmra.mxu0 %v797_v8  ;;  %v5499_v41 = vpack.c.b16 %v500_v60, %v849_v10  ;;  %v5503_v27 = vpack.c.b16 %v501_v62, %v850_v19  ;;  %v4620_v8 = vld [vmem:[#allocation6 + $0x468] sm:$0xff]  ;;  %v4627_v62 = vld [vmem:[#allocation6 + $0x4a0] sm:$0xff] }
 0x10d   : > { %2978 = vmatmul.bf16.gmra.mxu1 %v805_v17  ;;  %v5507_v46 = vpack.c.b16 %v502_v5, %v851_v9  ;;  %v5511_v51 = vpack.c.b16 %v503_v7, %v852_v20  ;;  %3219 = vmatpush.bf16.msra.mxu2 %v4627_v62  ;;  %v4634_v62 = vld [vmem:[#allocation6 + $0x4d8] sm:$0xff] }
 0x10e   : > { %3007 = vmatmul.bf16.gmra.mxu2 %v813_v54  ;;  %v862_v24 = vrot.slane %v5499_v41, 1  ;;  %v4635_v54 = vld [vmem:[#allocation6 + $0x4e0] sm:$0xff]  ;;  %v865_v5 = vrot.slane %v5503_v27, 1  ;;  %3189 = vmatpush.bf16.msra.mxu1 %v4620_v8  ;;  %v4626_v8 = vld [vmem:[#allocation6 + $0x498] sm:$0xff] }
 0x10f   : > { %3036 = vmatmul.bf16.gmra.mxu3 %v821_v47  ;;  %v863_v47 = vrot.slane %v5196_v56, 1  ;;  %v868_v7 = vrot.slane %v5507_v46, 1  ;;  %v871_v11 = vrot.slane %v5511_v51, 1 }
 0x110   : > { %3248 = vmatpush.bf16.msra.mxu3 %v4635_v54  ;;  %v867_v20 = vsel %vm861_vm8, %v865_v5, %v866_v31 }
 0x111   : > { %v2776_v39 = vpop.f32.mrf.mxu2  ;;  %v2720_v13 = vpop.f32.mrf.mxu0  ;;  %v864_v9 = vsel %vm861_vm8, %v862_v24, %v863_v47  ;;  %3220 = vmatpush.bf16.msra.mxu2 %v4626_v8 }
 0x112   : > { %v2805_v55 = vpop.f32.mrf.mxu3  ;;  %v2777_v17 = vadd.f32 %v2776_v39, %v2748_v26  ;;  %v2749_v22 = vpop.f32.mrf.mxu1  ;;  %v2721_v60 = vadd.f32 %v5364_v18, %v2720_v13  ;;  %v4611_v26 = vld [vmem:[#allocation6 + $0x420] sm:$0xff]  ;;  %v869_v18 = vrot.slane %v5200_v58, 1 }
 0x113   : > { %3161 = vmatpush.bf16.msra.mxu0 %v4611_v26 }
 0x114   : > { %v5514_v1 = vadd.f32 %v2805_v55, %v2777_v17  ;;  %v2750_v63 = vadd.f32 %v2749_v22, %v2721_v60  ;;  %v870_v55 = vsel %vm861_vm8, %v868_v7, %v869_v18  ;;  %v873_v17 = vsel %vm861_vm8, %v871_v11, %v872_v14  ;;  %v4619_v22 = vld [vmem:[#allocation6 + $0x460] sm:$0xff]  ;;  %3249 = vmatpush.bf16.msra.mxu3 %v4634_v62 }
 0x115   : > { %3190 = vmatpush.bf16.msra.mxu1 %v4619_v22 }
 0x119   : > { %v2778_v10 = vpop.f32.mrf.mxu2  ;;  %v2819_v23 = vpop.f32.mrf.mxu0 }
 0x11a   : > { %v2807_v19 = vpop.f32.mrf.mxu3  ;;  %v2779_v43 = vadd.f32 %v2778_v10, %v2750_v63  ;;  %v2848_v21 = vpop.f32.mrf.mxu1  ;;  %v2820_v39 = vadd.f32 %v2819_v23, %v5388_v50  ;;  %v4610_v63 = vld [vmem:[#allocation6 + $0x418] sm:$0xff]  ;;  %v4609_v23 = vld [vmem:[#allocation6 + $0x410] sm:$0xff] }
 0x11b   : > { %3162 = vmatpush.bf16.msra.mxu0 %v4610_v63  ;;  %v4618_v10 = vld [vmem:[#allocation6 + $0x458] sm:$0xff] }
 0x11c   : > { %v5529_v13 = vadd.f32 %v2807_v19, %v2779_v43  ;;  %v2849_v60 = vadd.f32 %v2848_v21, %v2820_v39  ;;  %3050 = vmatmul.bf16.vlgmr.msrb.gmra.mxu0 %v864_v9  ;;  %v4625_v43 = vld [vmem:[#allocation6 + $0x490] sm:$0xff]  ;;  %v880_v9 = vrot.slane %v5217_v34, 1  ;;  %3191 = vmatpush.bf16.msra.mxu1 %v4618_v10  ;;  %v884_v39 = vrot.slane %v5221_v36, 1  ;;  %v4632_v10 = vld [vmem:[#allocation6 + $0x4c8] sm:$0xff] }
 0x11d   : > { %3079 = vmatmul.bf16.vlgmr.msrb.gmra.mxu1 %v867_v20  ;;  %v4633_v21 = vld [vmem:[#allocation6 + $0x4d0] sm:$0xff]  ;;  %v882_v20 = vrot.slane %v5219_v35, 1  ;;  %3221 = vmatpush.bf16.msra.mxu2 %v4625_v43 }
 0x11e   : > { %3108 = vmatmul.bf16.vlgmr.msrb.gmra.mxu2 %v870_v55  ;;  %v886_v55 = vrot.slane %v5223_v37, 1  ;;  %3250 = vmatpush.bf16.msra.mxu3 %v4633_v21  ;;  %v881_v63 = vsel %vm861_vm8, %v863_v47, %v880_v9  ;;  %v4624_v47 = vld [vmem:[#allocation6 + $0x488] sm:$0xff] }
 0x11f   : > { %3137 = vmatmul.bf16.vlgmr.msrb.gmra.mxu3 %v873_v17  ;;  %3163 = vmatpush.bf16.msra.mxu0 %v4609_v23  ;;  %v883_v62 = vsel %vm861_vm8, %v866_v31, %v882_v20  ;;  %v4608_v31 = vld [vmem:[#allocation6 + $0x408] sm:$0xff] }
 0x121   : > { %v2877_v24 = vpop.f32.mrf.mxu2  ;;  %v2821_v54 = vpop.f32.mrf.mxu0  ;;  %3222 = vmatpush.bf16.msra.mxu2 %v4624_v47  ;;  %v5987_v47 = vshll.u32 %v5198_v57, 16 }
 0x122   : > { %v2906_v50 = vpop.f32.mrf.mxu3  ;;  %v2878_v26 = vadd.f32 %v2877_v24, %v2849_v60  ;;  %v2850_v5 = vpop.f32.mrf.mxu1  ;;  %v2822_v7 = vadd.f32 %v2821_v54, %v5411_v45  ;;  %3251 = vmatpush.bf16.msra.mxu3 %v4632_v10  ;;  %v5988_v10 = vshrl.u32 %v5196_v56, 16 }
 0x123   : > { %3164 = vmatpush.bf16.msra.mxu0 %v4608_v31  ;;  %v977_v31 = vrot.slane %v5987_v47, 2 }
 0x124   : > { %v5532_v11 = vadd.f32 %v2906_v50, %v2878_v26  ;;  %v2851_v19 = vadd.f32 %v2850_v5, %v2822_v7  ;;  %v885_v50 = vsel %vm861_vm8, %v869_v18, %v884_v39  ;;  %v887_v26 = vsel %vm861_vm8, %v872_v14, %v886_v55  ;;  %v4617_v5 = vld [vmem:[#allocation6 + $0x450] sm:$0xff] }
 0x125   : > { %3192 = vmatpush.bf16.msra.mxu1 %v4617_v5  ;;  %v894_v5 = vrot.slane %v5235_v3, 1 }
 0x127   : > { %v895_v56 = vsel %vm861_vm8, %v882_v20, %v894_v5 }
 0x129   : > { %v2879_v45 = vpop.f32.mrf.mxu2  ;;  %v2824_v60 = vpop.f32.mrf.mxu0 }
 0x12a   : > { %v2908_v17 = vpop.f32.mrf.mxu3  ;;  %v2880_v22 = vadd.f32 %v2879_v45, %v2851_v19  ;;  %v2853_v8 = vpop.f32.mrf.mxu1  ;;  %v2825_v24 = vadd.f32 %v2824_v60, %v5422_v30  ;;  %v4616_v45 = vld [vmem:[#allocation6 + $0x448] sm:$0xff] }
 0x12b   : > { %3193 = vmatpush.bf16.msra.mxu1 %v4616_v45 }
 0x12c   : > { %v5551_v54 = vadd.f32 %v2908_v17, %v2880_v22  ;;  %v2854_v7 = vadd.f32 %v2853_v8, %v2825_v24  ;;  %3055 = vmatmul.bf16.gmra.mxu0 %v881_v63  ;;  %v957_v17 = vshrl.u32 %v5499_v41, 16  ;;  %v960_v22 = vshll.u32 %v5499_v41, 16  ;;  %v4623_v63 = vld [vmem:[#allocation6 + $0x480] sm:$0xff] }
 0x12d   : > { %3084 = vmatmul.bf16.gmra.mxu1 %v883_v62  ;;  %v892_v8 = vrot.slane %v5233_v2, 1  ;;  %v4607_v62 = vld [vmem:[#allocation6 + $0x400] sm:$0xff]  ;;  %3223 = vmatpush.bf16.msra.mxu2 %v4623_v63  ;;  %v965_v41 = vrot.slane %v614_v38, 2 }
 0x12e   : > { %3113 = vmatmul.bf16.gmra.mxu2 %v885_v50  ;;  %v4631_v24 = vld [vmem:[#allocation6 + $0x4c0] sm:$0xff]  ;;  %v969_v50 = vshrl.u32 %v5503_v27, 16  ;;  %3165 = vmatpush.bf16.msra.mxu0 %v4607_v62  ;;  %v959_v38 = vrot.slane %v957_v17, 1  ;;  %v962_v45 = vrot.slane %v960_v22, 2 }
 0x12f   : > { %3142 = vmatmul.bf16.gmra.mxu3 %v887_v26  ;;  %v972_v26 = vshll.u32 %v5503_v27, 16  ;;  %v5989_v27 = vshrl.u32 %v5198_v57, 16 }
 0x130   : > { %3252 = vmatpush.bf16.msra.mxu3 %v4631_v24  ;;  %v971_v57 = vrot.slane %v969_v50, 1  ;;  %v963_v20 = vor.u32 %v962_v45, %v959_v38  ;;  %v4654_v45 = vld [vmem:[#allocation6 + $0x578] sm:$0xff] }
 0x131   : > { %v2882_v30 = vpop.f32.mrf.mxu2  ;;  %v2826_v43 = vpop.f32.mrf.mxu0  ;;  %v974_v24 = vrot.slane %v972_v26, 2  ;;  %v4662_v26 = vld [vmem:[#allocation6 + $0x5b8] sm:$0xff] }
 0x132   : > { %v2911_v18 = vpop.f32.mrf.mxu3  ;;  %v2883_v19 = vadd.f32 %v2882_v30, %v2854_v7  ;;  %v2855_v14 = vpop.f32.mrf.mxu1  ;;  %v2827_v23 = vadd.f32 %v2826_v43, %v5457_v52  ;;  %v896_v52 = vrot.slane %v5237_v4, 1  ;;  %v898_v7 = vrot.slane %v5239_v6, 1  ;;  %3332 = vmatpush.bf16.msrb.mxu2 %v4662_v26 }
 0x133   : > { %v964_v30 = vrot.slane %v5988_v10, 1  ;;  %v975_v50 = vor.u32 %v974_v24, %v971_v57  ;;  %v904_v57 = vrot.slane %v5325_v15, 1  ;;  %v906_v24 = vrot.slane %v5327_v49, 1  ;;  %v466_v49 = vld [vmem:[#allocation2 + $0x10] sm:$0xee] }
 0x134   : > { %v5554_v21 = vadd.f32 %v2911_v18, %v2883_v19  ;;  %v2856_v60 = vadd.f32 %v2855_v14, %v2827_v23  ;;  %v976_v18 = vrot.slane %v5989_v27, 1  ;;  %v893_v14 = vsel %vm861_vm8, %v880_v9, %v892_v8  ;;  %v4615_v23 = vld [vmem:[#allocation6 + $0x440] sm:$0xff]  ;;  %v4646_v27 = vld [vmem:[#allocation6 + $0x538] sm:$0xff] }
 0x135   : > { %v897_v9 = vsel %vm861_vm8, %v884_v39, %v896_v52  ;;  %v899_v17 = vsel %vm861_vm8, %v886_v55, %v898_v7  ;;  %3194 = vmatpush.bf16.msra.mxu1 %v4615_v23  ;;  %3274 = vmatpush.bf16.msrb.mxu0 %v4646_v27  ;;  %v905_v26 = vsel %vm861_vm8, %v892_v8, %v904_v57  ;;  %v853_v8 = vunpack.c.l.b16 %v466_v49 }
 0x136   : > { %v5597_v39 = vor.u32 %v977_v31, %v976_v18  ;;  %v907_v15 = vsel %vm861_vm8, %v894_v5, %v906_v24  ;;  %v4660_v5 = vld [vmem:[#allocation6 + $0x5a8] sm:$0xff] }
 0x139   : > { %v2884_v19 = vpop.f32.mrf.mxu2  ;;  %v2829_v62 = vpop.f32.mrf.mxu0  ;;  %3303 = vmatpush.bf16.msrb.mxu1 %v4654_v45  ;;  %v5991_v45 = vunpack.c.h.b16 %v5214_v25 }
 0x13a   : > { %v2913_v43 = vpop.f32.mrf.mxu3  ;;  %v2885_v63 = vadd.f32 %v2884_v19, %v2856_v60  ;;  %v2858_v47 = vpop.f32.mrf.mxu1  ;;  %v2830_v10 = vadd.f32 %v2829_v62, %v5476_v16  ;;  %v5595_v16 = vor.u32 %v965_v41, %v964_v30  ;;  %v4670_v19 = vld [vmem:[#allocation6 + $0x5f8] sm:$0xff]  ;;  %v4661_v62 = vld [vmem:[#allocation6 + $0x5b0] sm:$0xff] }
 0x13b   : > { %3361 = vmatpush.bf16.msrb.mxu3 %v4670_v19  ;;  %3333 = vmatpush.bf16.msrb.mxu2 %v4661_v62 }
 0x13c   : > { %v5593_v22 = vadd.f32 %v2913_v43, %v2885_v63  ;;  %v2859_v60 = vadd.f32 %v2858_v47, %v2830_v10  ;;  %3060 = vmatmul.bf16.gmra.mxu0 %v893_v14  ;;  %v5601_v55 = vsel %vm955_vm9, %v963_v20, %v5595_v16  ;;  %v5605_v43 = vsel %vm955_vm9, %v975_v50, %v5597_v39  ;;  %v4645_v47 = vld [vmem:[#allocation6 + $0x530] sm:$0xff] }
 0x13d   : > { %3089 = vmatmul.bf16.gmra.mxu1 %v895_v56  ;;  %v4669_v56 = vld [vmem:[#allocation6 + $0x5f0] sm:$0xff]  ;;  %v908_v10 = vrot.slane %v5459_v32, 1  ;;  %3275 = vmatpush.bf16.msrb.mxu0 %v4645_v47 }
 0x13e   : > { %3118 = vmatmul.bf16.gmra.mxu2 %v897_v9  ;;  %v910_v9 = vrot.slane %v5461_v53, 1 }
 0x13f   : > { %3147 = vmatmul.bf16.gmra.mxu3 %v899_v17  ;;  %v909_v53 = vsel %vm861_vm8, %v896_v52, %v908_v10  ;;  %3334 = vmatpush.bf16.msrb.mxu2 %v4660_v5  ;;  %v4652_v10 = vld [vmem:[#allocation6 + $0x568] sm:$0xff] }
 0x140   : > { %3362 = vmatpush.bf16.msrb.mxu3 %v4669_v56  ;;  %v911_v27 = vsel %vm861_vm8, %v898_v7, %v910_v9  ;;  %v5990_v7 = vunpack.c.l.b16 %v5214_v25 }
 0x141   : > { %v2887_v41 = vpop.f32.mrf.mxu2  ;;  %v2831_v23 = vpop.f32.mrf.mxu0 }
 0x142   : > { %v2916_v30 = vpop.f32.mrf.mxu3  ;;  %v2888_v14 = vadd.f32 %v2887_v41, %v2859_v60  ;;  %v2860_v31 = vpop.f32.mrf.mxu1  ;;  %v2832_v18 = vadd.f32 %v2831_v23, %v5495_v48  ;;  %v4653_v41 = vld [vmem:[#allocation6 + $0x570] sm:$0xff]  ;;  %v4668_v23 = vld [vmem:[#allocation6 + $0x5e8] sm:$0xff] }
 0x143   : > { %3304 = vmatpush.bf16.msrb.mxu1 %v4653_v41 }
 0x144   : > { %v5608_v38 = vadd.f32 %v2916_v30, %v2888_v14  ;;  %v2861_v63 = vadd.f32 %v2860_v31, %v2832_v18  ;;  %v854_v14 = vunpack.c.h.b16 %v466_v49  ;;  %3363 = vmatpush.bf16.msrb.mxu3 %v4668_v23  ;;  %v5631_v18 = vpack.c.b16 %v5990_v7, %v853_v8  ;;  %v4642_v23 = vld [vmem:[#allocation6 + $0x518] sm:$0xff] }
 0x147   : > { %3305 = vmatpush.bf16.msrb.mxu1 %v4652_v10  ;;  %v5994_v10 = vshrl.u32 %v5219_v35, 16 }
 0x149   : > { %v2889_v48 = vpop.f32.mrf.mxu2  ;;  %v2834_v60 = vpop.f32.mrf.mxu0 }
 0x14a   : > { %v2918_v17 = vpop.f32.mrf.mxu3  ;;  %v2890_v20 = vadd.f32 %v2889_v48, %v2861_v63  ;;  %v2863_v50 = vpop.f32.mrf.mxu1  ;;  %v2835_v32 = vadd.f32 %v2834_v60, %v5514_v1  ;;  %v4644_v1 = vld [vmem:[#allocation6 + $0x528] sm:$0xff]  ;;  %v5635_v63 = vpack.c.b16 %v5991_v45, %v854_v14  ;;  %v4659_v48 = vld [vmem:[#allocation6 + $0x5a0] sm:$0xff]  ;;  %v874_v60 = vrot.slane %v5631_v18, 1 }
 0x14b   : > { %3276 = vmatpush.bf16.msrb.mxu0 %v4644_v1  ;;  %3335 = vmatpush.bf16.msrb.mxu2 %v4659_v48  ;;  %v4651_v14 = vld [vmem:[#allocation6 + $0x560] sm:$0xff]  ;;  %v4658_v1 = vld [vmem:[#allocation6 + $0x598] sm:$0xff]  ;;  %v5995_v48 = vshll.u32 %v5219_v35, 16 }
 0x14c   : > { %v5627_v19 = vadd.f32 %v2918_v17, %v2890_v20  ;;  %v2864_v30 = vadd.f32 %v2863_v50, %v2835_v32  ;;  %3065 = vmatmul.bf16.gmra.mxu0 %v905_v26  ;;  %v4643_v17 = vld [vmem:[#allocation6 + $0x520] sm:$0xff]  ;;  %v875_v50 = vrot.slane %v5297_v42, 1  ;;  %v877_v25 = vrot.slane %v5635_v63, 1  ;;  %3306 = vmatpush.bf16.msrb.mxu1 %v4651_v14 }
 0x14d   : > { %3094 = vmatmul.bf16.gmra.mxu1 %v907_v15  ;;  %v4667_v20 = vld [vmem:[#allocation6 + $0x5e0] sm:$0xff]  ;;  %v878_v26 = vrot.slane %v5299_v44, 1 }
 0x14e   : > { %3123 = vmatmul.bf16.gmra.mxu2 %v909_v53  ;;  %3364 = vmatpush.bf16.msrb.mxu3 %v4667_v20 }
 0x14f   : > { %3152 = vmatmul.bf16.gmra.mxu3 %v911_v27  ;;  %3277 = vmatpush.bf16.msrb.mxu0 %v4643_v17  ;;  %v876_v27 = vsel %vm861_vm8, %v874_v60, %v875_v50  ;;  %v879_v41 = vsel %vm861_vm8, %v877_v25, %v878_v26  ;;  %v1033_v17 = vrot.slane %v5995_v48, 2  ;;  %v4650_v60 = vld [vmem:[#allocation6 + $0x558] sm:$0xff] }
 0x150   : > { %3336 = vmatpush.bf16.msrb.mxu2 %v4658_v1  ;;  %3307 = vmatpush.bf16.msrb.mxu1 %v4650_v60 }
 0x151   : > { %v2892_v52 = vpop.f32.mrf.mxu2  ;;  %v2836_v47 = vpop.f32.mrf.mxu0 }
 0x152   : > { %v2921_v31 = vpop.f32.mrf.mxu3  ;;  %v2893_v62 = vadd.f32 %v2892_v52, %v2864_v30  ;;  %v2865_v56 = vpop.f32.mrf.mxu1  ;;  %v2837_v57 = vadd.f32 %v2836_v47, %v5529_v13  ;;  %v4666_v52 = vld [vmem:[#allocation6 + $0x5d8] sm:$0xff]  ;;  %v5992_v47 = vshrl.u32 %v5217_v34, 16 }
 0x153   : > { %3278 = vmatpush.bf16.msrb.mxu0 %v4642_v23  ;;  %3365 = vmatpush.bf16.msrb.mxu3 %v4666_v52 }
 0x154   : > { %v5638_v24 = vadd.f32 %v2921_v31, %v2893_v62  ;;  %v2866_v9 = vadd.f32 %v2865_v56, %v2837_v57  ;;  %v1028_v56 = vrot.slane %v5992_v47, 1  ;;  %v5996_v47 = vshrl.u32 %v5233_v2, 16 }
 0x159   : > { %v2894_v13 = vpop.f32.mrf.mxu2  ;;  %v2935_v32 = vpop.f32.mrf.mxu0 }
 0x15a   : > { %v2923_v15 = vpop.f32.mrf.mxu3  ;;  %v2895_v49 = vadd.f32 %v2894_v13, %v2866_v9  ;;  %v2964_v53 = vpop.f32.mrf.mxu1  ;;  %v2936_v30 = vadd.f32 %v2935_v32, %v5532_v11  ;;  %v1032_v9 = vrot.slane %v5994_v10, 1  ;;  %v4657_v13 = vld [vmem:[#allocation6 + $0x590] sm:$0xff]  ;;  %v888_v32 = vrot.slane %v5317_v28, 1 }
 0x15b   : > { %3337 = vmatpush.bf16.msrb.mxu2 %v4657_v13  ;;  %v5999_v10 = vshll.u32 %v5235_v3, 16  ;;  %v467_v13 = vld [vmem:[#allocation2 + $0xc0] sm:$0x33] }
 0x15c   : > { %v5647_v8 = vadd.f32 %v2923_v15, %v2895_v49  ;;  %v2965_v5 = vadd.f32 %v2964_v53, %v2936_v30  ;;  %3166 = vmatmul.bf16.vlgmr.msra.gmra.mxu0 %v876_v27  ;;  %v4641_v15 = vld [vmem:[#allocation6 + $0x510] sm:$0xff]  ;;  %v5666_v53 = vor.u32 %v1033_v17, %v1032_v9 }
 0x15d   : > { %3195 = vmatmul.bf16.vlgmr.msra.gmra.mxu1 %v879_v41  ;;  %v4665_v49 = vld [vmem:[#allocation6 + $0x5d0] sm:$0xff]  ;;  %3279 = vmatpush.bf16.msrb.mxu0 %v4641_v15  ;;  %v1057_v9 = vrot.slane %v5999_v10, 2  ;;  %v1005_v15 = vshrl.u32 %v5631_v18, 16  ;;  %v6007_v10 = vshrl.u32 %v5299_v44, 16 }
 0x15e   : > { %3224 = vmatmul.bf16.vlgmr.msra.gmra.mxu2 %v5601_v55  ;;  %v5993_v55 = vshll.u32 %v5217_v34, 16  ;;  %3366 = vmatpush.bf16.msrb.mxu3 %v4665_v49  ;;  %v1008_v49 = vshll.u32 %v5631_v18, 16  ;;  %v6000_v18 = vshll.u32 %v5200_v58, 16 }
 0x15f   : > { %3253 = vmatmul.bf16.vlgmr.msra.gmra.mxu3 %v5605_v43 }
 0x160   : > { %v1029_v43 = vrot.slane %v5993_v55, 2  ;;  %v5998_v55 = vshrl.u32 %v5235_v3, 16  ;;  %v902_v3 = vrot.slane %v5339_v40, 1 }
 0x161   : > { %v2993_v31 = vpop.f32.mrf.mxu2  ;;  %v2937_v45 = vpop.f32.mrf.mxu0 }
 0x162   : > { %v3022_v7 = vpop.f32.mrf.mxu3  ;;  %v2994_v11 = vadd.f32 %v2993_v31, %v2965_v5  ;;  %v2966_v62 = vpop.f32.mrf.mxu1  ;;  %v2938_v57 = vadd.f32 %v2937_v45, %v5551_v54  ;;  %v890_v54 = vrot.slane %v5319_v29, 1  ;;  %v5664_v34 = vor.u32 %v1029_v43, %v1028_v56 }
 0x163   : > { %v889_v5 = vsel %vm861_vm8, %v875_v50, %v888_v32  ;;  %v1035_v31 = vsel %vm955_vm9, %v5597_v39, %v5666_v53  ;;  %v4656_v50 = vld [vmem:[#allocation6 + $0x588] sm:$0xff]  ;;  %v1052_v56 = vrot.slane %v5996_v47, 1  ;;  %v5997_v39 = vshll.u32 %v5233_v2, 16 }
 0x164   : > { %v5660_v20 = vadd.f32 %v3022_v7, %v2994_v11  ;;  %v2967_v25 = vadd.f32 %v2966_v62, %v2938_v57  ;;  %v891_v1 = vsel %vm861_vm8, %v878_v26, %v890_v54  ;;  %v1031_v52 = vsel %vm955_vm9, %v5595_v16, %v5664_v34  ;;  %v4649_v11 = vld [vmem:[#allocation6 + $0x550] sm:$0xff]  ;;  %v4640_v26 = vld [vmem:[#allocation6 + $0x508] sm:$0xff]  ;;  %3338 = vmatpush.bf16.msrb.mxu2 %v4656_v50 }
 0x165   : > { %v4664_v62 = vld [vmem:[#allocation6 + $0x5c8] sm:$0xff]  ;;  %3308 = vmatpush.bf16.msrb.mxu1 %v4649_v11  ;;  %3280 = vmatpush.bf16.msrb.mxu0 %v4640_v26  ;;  %v1053_v57 = vrot.slane %v5997_v39, 2  ;;  %v1056_v43 = vrot.slane %v5998_v55, 1  ;;  %v900_v2 = vrot.slane %v5337_v33, 1  ;;  %v943_v11 = vunpack.c.l.b16 %v467_v13 }
 0x166   : > { %3367 = vmatpush.bf16.msrb.mxu3 %v4664_v62  ;;  %v6002_v26 = vshll.u32 %v5297_v42, 16  ;;  %v944_v47 = vunpack.c.h.b16 %v467_v13  ;;  %v6005_v39 = vshrl.u32 %v5202_v59, 16  ;;  %v6006_v55 = vshrl.u32 %v5297_v42, 16 }
 0x168   : > { %v1013_v62 = vrot.slane %v6002_v26, 2 }
 0x169   : > { %v2995_v35 = vpop.f32.mrf.mxu2  ;;  %v2940_v30 = vpop.f32.mrf.mxu0 }
 0x16a   : > { %v3024_v27 = vpop.f32.mrf.mxu3  ;;  %v2996_v41 = vadd.f32 %v2995_v35, %v2967_v25  ;;  %v2969_v14 = vpop.f32.mrf.mxu1  ;;  %v2941_v23 = vadd.f32 %v2940_v30, %v5554_v21  ;;  %v5698_v30 = vor.u32 %v1053_v57, %v1052_v56  ;;  %v6004_v56 = vshll.u32 %v5299_v44, 16 }
 0x16b   : > { %v1000_v57 = vrot.slane %v6005_v39, 1 }
 0x16c   : > { %v5681_v7 = vadd.f32 %v3024_v27, %v2996_v41  ;;  %v2970_v45 = vadd.f32 %v2969_v14, %v2941_v23  ;;  %3171 = vmatmul.bf16.gmra.mxu0 %v889_v5  ;;  %v4648_v27 = vld [vmem:[#allocation6 + $0x548] sm:$0xff]  ;;  %v5700_v14 = vor.u32 %v1057_v9, %v1056_v43  ;;  %v4655_v5 = vld [vmem:[#allocation6 + $0x580] sm:$0xff]  ;;  %v1017_v23 = vshrl.u32 %v5635_v63, 16 }
 0x16d   : > { %3200 = vmatmul.bf16.gmra.mxu1 %v891_v1  ;;  %v4639_v1 = vld [vmem:[#allocation6 + $0x500] sm:$0xff]  ;;  %3339 = vmatpush.bf16.msrb.mxu2 %v4655_v5  ;;  %v1012_v43 = vrot.slane %v6006_v55, 1  ;;  %v1024_v9 = vrot.slane %v6007_v10, 1  ;;  %v1055_v42 = vsel %vm955_vm9, %v5664_v34, %v5698_v30  ;;  %v949_v5 = vpack.c.b16 %v943_v11, %v943_v11 }
 0x16e   : > { %3229 = vmatmul.bf16.gmra.mxu2 %v1031_v52  ;;  %v1020_v52 = vshll.u32 %v5635_v63, 16  ;;  %3309 = vmatpush.bf16.msrb.mxu1 %v4648_v27  ;;  %v1025_v63 = vrot.slane %v6004_v56, 2  ;;  %v1059_v44 = vsel %vm955_vm9, %v5666_v53, %v5700_v14 }
 0x16f   : > { %3258 = vmatmul.bf16.gmra.mxu3 %v1035_v31  ;;  %v989_v31 = vrot.slane %v6000_v18, 2  ;;  %3281 = vmatpush.bf16.msrb.mxu0 %v4639_v1  ;;  %v1010_v1 = vrot.slane %v1008_v49, 2  ;;  %v950_v18 = vpack.c.b16 %v944_v47, %v944_v47  ;;  %v5743_v53 = vor.u32 %v1013_v62, %v1012_v43 }
 0x170   : > { %v1022_v11 = vrot.slane %v1020_v52, 2 }
 0x171   : > { %v2998_v21 = vpop.f32.mrf.mxu2  ;;  %v2942_v17 = vpop.f32.mrf.mxu0 }
 0x172   : > { %v3027_v16 = vpop.f32.mrf.mxu3  ;;  %v2999_v48 = vadd.f32 %v2998_v21, %v2970_v45  ;;  %v2971_v60 = vpop.f32.mrf.mxu1  ;;  %v2943_v25 = vadd.f32 %v2942_v17, %v5593_v22  ;;  %v4663_v22 = vld [vmem:[#allocation6 + $0x5c0] sm:$0xff]  ;;  %v6001_v45 = vshll.u32 %v5202_v59, 16  ;;  %v6003_v21 = vshrl.u32 %v5200_v58, 16 }
 0x173   : > { %3368 = vmatpush.bf16.msrb.mxu3 %v4663_v22  ;;  %v901_v58 = vsel %vm861_vm8, %v888_v32, %v900_v2  ;;  %v903_v59 = vsel %vm861_vm8, %v890_v54, %v902_v3  ;;  %v1007_v32 = vrot.slane %v1005_v15, 1  ;;  %v5745_v15 = vor.u32 %v1025_v63, %v1024_v9 }
 0x174   : > { %v5694_v35 = vadd.f32 %v3027_v16, %v2999_v48  ;;  %v2972_v41 = vadd.f32 %v2971_v60, %v2943_v25  ;;  %v1001_v50 = vrot.slane %v6001_v45, 2  ;;  %v988_v16 = vrot.slane %v6003_v21, 1  ;;  %v4647_v60 = vld [vmem:[#allocation6 + $0x540] sm:$0xff] }
 0x175   : > { %3310 = vmatpush.bf16.msrb.mxu1 %v4647_v60  ;;  %v1019_v45 = vrot.slane %v1017_v23, 1  ;;  %v1011_v21 = vor.u32 %v1010_v1, %v1007_v32  ;;  %v1080_v23 = vshll.u32 %v949_v5, 16 }
 0x176   : > { %v5737_v54 = vor.u32 %v989_v31, %v988_v16  ;;  %v5741_v34 = vor.u32 %v1001_v50, %v1000_v57  ;;  %v1086_v31 = vshrl.u32 %v950_v18, 16  ;;  %v1089_v50 = vshll.u32 %v950_v18, 16 }
 0x177   : > { %v5749_v49 = vsel %vm955_vm9, %v1011_v21, %v5743_v53  ;;  %v1023_v16 = vor.u32 %v1022_v11, %v1019_v45  ;;  %v1082_v43 = vrot.slane %v1080_v23, 2  ;;  %v981_v18 = vshrl.u32 %v5507_v46, 16 }
 0x178   : > { %v1088_v10 = vrot.slane %v1086_v31, 1  ;;  %v1091_v9 = vrot.slane %v1089_v50, 2  ;;  %v993_v21 = vshrl.u32 %v5511_v51, 16 }
 0x179   : > { %v3000_v48 = vpop.f32.mrf.mxu2  ;;  %v2945_v13 = vpop.f32.mrf.mxu0  ;;  %v1027_v56 = vsel %vm955_vm9, %v1023_v16, %v5745_v15 }
 0x17a   : > { %v3029_v17 = vpop.f32.mrf.mxu3  ;;  %v3001_v25 = vadd.f32 %v3000_v48, %v2972_v41  ;;  %v2974_v27 = vpop.f32.mrf.mxu1  ;;  %v2946_v22 = vadd.f32 %v2945_v13, %v5608_v38  ;;  %v1077_v38 = vshrl.u32 %v949_v5, 16  ;;  %v995_v31 = vrot.slane %v993_v21, 1 }
 0x17c   : > { %v5739_v26 = vadd.f32 %v3029_v17, %v3001_v25  ;;  %v2975_v41 = vadd.f32 %v2974_v27, %v2946_v22  ;;  %3176 = vmatmul.bf16.gmra.mxu0 %v901_v58  ;;  %v1079_v57 = vrot.slane %v1077_v38, 1  ;;  %v912_v58 = vrot.slane %v5463_v61, 1 }
 0x17d   : > { %3205 = vmatmul.bf16.gmra.mxu1 %v903_v59  ;;  %v914_v59 = vrot.slane %v5465_v12, 1 }
 0x17e   : > { %3234 = vmatmul.bf16.gmra.mxu2 %v1055_v42  ;;  %v1083_v42 = vor.u32 %v1082_v43, %v1079_v57 }
 0x17f   : > { %3263 = vmatmul.bf16.gmra.mxu3 %v1059_v44  ;;  %v1092_v44 = vor.u32 %v1091_v9, %v1088_v10  ;;  %v915_v32 = vsel %vm861_vm8, %v902_v3, %v914_v59  ;;  %v996_v3 = vshll.u32 %v5511_v51, 16 }
 0x180   : > { %v1084_v61 = vsel %vm955_vm9, %v5698_v30, %v1083_v42  ;;  %v6008_v42 = vshrl.u32 %v5221_v36, 16 }
 0x181   : > { %v3003_v47 = vpop.f32.mrf.mxu2  ;;  %v2947_v52 = vpop.f32.mrf.mxu0  ;;  %v1093_v12 = vsel %vm955_vm9, %v5700_v14, %v1092_v44  ;;  %v998_v50 = vrot.slane %v996_v3, 2 }
 0x182   : > { %v3032_v62 = vpop.f32.mrf.mxu3  ;;  %v3004_v39 = vadd.f32 %v3003_v47, %v2975_v41  ;;  %v2976_v63 = vpop.f32.mrf.mxu1  ;;  %v2948_v55 = vadd.f32 %v2947_v52, %v5627_v19  ;;  %v913_v19 = vsel %vm861_vm8, %v900_v2, %v912_v58  ;;  %v984_v2 = vshll.u32 %v5507_v46, 16 }
 0x183   : > { %v983_v41 = vrot.slane %v981_v18, 1  ;;  %v1036_v44 = vrot.slane %v6008_v42, 1  ;;  %v6020_v42 = vshll.u32 %v5337_v33, 16 }
 0x184   : > { %v5754_v48 = vadd.f32 %v3032_v62, %v3004_v39  ;;  %v2977_v17 = vadd.f32 %v2976_v63, %v2948_v55  ;;  %v986_v23 = vrot.slane %v984_v2, 2  ;;  %v999_v39 = vor.u32 %v998_v50, %v995_v31 }
 0x185   : > { %v6015_v2 = vshll.u32 %v5319_v29, 16 }
 0x186   : > { %v987_v62 = vor.u32 %v986_v23, %v983_v41  ;;  %v1003_v10 = vsel %vm955_vm9, %v999_v39, %v5741_v34 }
 0x187   : > { %v1049_v21 = vrot.slane %v6015_v2, 2 }
 0x188   : > { %v991_v43 = vsel %vm955_vm9, %v987_v62, %v5737_v54 }
 0x189   : > { %v3005_v60 = vpop.f32.mrf.mxu2  ;;  %v2950_v27 = vpop.f32.mrf.mxu0 }
 0x18a   : > { %v3034_v25 = vpop.f32.mrf.mxu3  ;;  %v3006_v13 = vadd.f32 %v3005_v60, %v2977_v17  ;;  %v2979_v5 = vpop.f32.mrf.mxu1  ;;  %v2951_v1 = vadd.f32 %v2950_v27, %v5638_v24  ;;  %v6009_v60 = vshll.u32 %v5221_v36, 16  ;;  %v6014_v36 = vshrl.u32 %v5319_v29, 16 }
 0x18c   : > { %v5769_v22 = vadd.f32 %v3034_v25, %v3006_v13  ;;  %v2980_v45 = vadd.f32 %v2979_v5, %v2951_v1  ;;  %3181 = vmatmul.bf16.gmra.mxu0 %v913_v19  ;;  %v1037_v25 = vrot.slane %v6009_v60, 2 }
 0x18d   : > { %3210 = vmatmul.bf16.gmra.mxu1 %v915_v32  ;;  %v6011_v32 = vshll.u32 %v5223_v37, 16 }
 0x18e   : > { %3239 = vmatmul.bf16.gmra.mxu2 %v1084_v61 }
 0x18f   : > { %3268 = vmatmul.bf16.gmra.mxu3 %v1093_v12  ;;  %v1041_v1 = vrot.slane %v6011_v32, 2  ;;  %v6013_v12 = vshll.u32 %v5317_v28, 16 }
 0x191   : > { %v3008_v24 = vpop.f32.mrf.mxu2  ;;  %v2952_v14 = vpop.f32.mrf.mxu0  ;;  %v1045_v18 = vrot.slane %v6013_v12, 2 }
 0x192   : > { %v3037_v30 = vpop.f32.mrf.mxu3  ;;  %v3009_v11 = vadd.f32 %v3008_v24, %v2980_v45  ;;  %v2981_v38 = vpop.f32.mrf.mxu1  ;;  %v2953_v16 = vadd.f32 %v2952_v14, %v5647_v8  ;;  %v1048_v45 = vrot.slane %v6014_v36, 1 }
 0x194   : > { %v5776_v47 = vadd.f32 %v3037_v30, %v3009_v11  ;;  %v2982_v46 = vadd.f32 %v2981_v38, %v2953_v16  ;;  %v1038_v30 = vor.u32 %v1037_v25, %v1036_v44  ;;  %v1050_v11 = vor.u32 %v1049_v21, %v1048_v45 }
 0x195   : > { %v1069_v44 = vrot.slane %v6020_v42, 2  ;;  %v6022_v25 = vshll.u32 %v5339_v40, 16 }
 0x199   : > { %v3010_v52 = vpop.f32.mrf.mxu2  ;;  %v3051_v57 = vpop.f32.mrf.mxu0 }
 0x19a   : > { %v3039_v51 = vpop.f32.mrf.mxu3  ;;  %v3011_v63 = vadd.f32 %v3010_v52, %v2982_v46  ;;  %v3080_v55 = vpop.f32.mrf.mxu1  ;;  %v3052_v9 = vadd.f32 %v3051_v57, %v5660_v20  ;;  %v6010_v20 = vshrl.u32 %v5223_v37, 16  ;;  %v1051_v46 = vsel %vm955_vm9, %v5745_v15, %v1050_v11 }
 0x19b   : > { %v6018_v15 = vshrl.u32 %v5239_v6, 16 }
 0x19c   : > { %v5783_v17 = vadd.f32 %v3039_v51, %v3011_v63  ;;  %v3081_v8 = vadd.f32 %v3080_v55, %v3052_v9  ;;  %3282 = vmatmul.bf16.vlgmr.msrb.gmra.mxu0 %v991_v43  ;;  %v1040_v19 = vrot.slane %v6010_v20, 1  ;;  %v6016_v51 = vshrl.u32 %v5237_v4, 16 }
 0x19d   : > { %3311 = vmatmul.bf16.vlgmr.msrb.gmra.mxu1 %v1003_v10  ;;  %v1064_v43 = vrot.slane %v6018_v15, 1  ;;  %v6019_v10 = vshll.u32 %v5239_v6, 16 }
 0x19e   : > { %3340 = vmatmul.bf16.vlgmr.msrb.gmra.mxu2 %v5749_v49  ;;  %v6012_v49 = vshrl.u32 %v5317_v28, 16  ;;  %v1042_v37 = vor.u32 %v1041_v1, %v1040_v19  ;;  %v1039_v28 = vsel %vm955_vm9, %v5737_v54, %v1038_v30 }
 0x19f   : > { %3369 = vmatmul.bf16.vlgmr.msrb.gmra.mxu3 %v1027_v56  ;;  %v1065_v9 = vrot.slane %v6019_v10, 2 }
 0x1a0   : > { %v1044_v56 = vrot.slane %v6012_v49, 1  ;;  %v1043_v50 = vsel %vm955_vm9, %v5741_v34, %v1042_v37  ;;  %v1060_v34 = vrot.slane %v6016_v51, 1 }
 0x1a1   : > { %v3109_v58 = vpop.f32.mrf.mxu2  ;;  %v3053_v27 = vpop.f32.mrf.mxu0  ;;  %v1066_v32 = vor.u32 %v1065_v9, %v1064_v43 }
 0x1a2   : > { %v3138_v59 = vpop.f32.mrf.mxu3  ;;  %v3110_v13 = vadd.f32 %v3109_v58, %v3081_v8  ;;  %v3082_v5 = vpop.f32.mrf.mxu1  ;;  %v3054_v61 = vadd.f32 %v3053_v27, %v5681_v7  ;;  %v1046_v41 = vor.u32 %v1045_v18, %v1044_v56  ;;  %v1068_v8 = vrot.slane %v806_v0, 1  ;;  %v468_v58 = vld [vmem:[#allocation2 + $0xc8] sm:$0x33]  ;;  %v469_v27 = vld [vmem:[#allocation2 + $0xd0] sm:$0x33] }
 0x1a3   : > { %v945_v19 = vunpack.c.l.b16 %v468_v58  ;;  %v946_v0 = vunpack.c.h.b16 %v468_v58  ;;  %v947_v1 = vunpack.c.l.b16 %v469_v27  ;;  %v948_v56 = vunpack.c.h.b16 %v469_v27 }
 0x1a4   : > { %v5803_v3 = vadd.f32 %v3138_v59, %v3110_v13  ;;  %v3083_v24 = vadd.f32 %v3082_v5, %v3054_v61  ;;  %v1047_v16 = vsel %vm955_vm9, %v5743_v53, %v1046_v41  ;;  %v1073_v13 = vrot.slane %v6022_v25, 2 }
 0x1a5   : > { %v1070_v49 = vor.u32 %v1069_v44, %v1068_v8  ;;  %v951_v18 = vpack.c.b16 %v945_v19, %v945_v19  ;;  %v1067_v2 = vsel %vm955_vm9, %v1042_v37, %v1066_v32  ;;  %v952_v21 = vpack.c.b16 %v946_v0, %v946_v0 }
 0x1a7   : > { %v1107_v37 = vshll.u32 %v952_v21, 16 }
 0x1a9   : > { %v3111_v14 = vpop.f32.mrf.mxu2  ;;  %v3056_v7 = vpop.f32.mrf.mxu0 }
 0x1aa   : > { %v3140_v38 = vpop.f32.mrf.mxu3  ;;  %v3112_v23 = vadd.f32 %v3111_v14, %v3083_v24  ;;  %v3085_v31 = vpop.f32.mrf.mxu1  ;;  %v3057_v29 = vadd.f32 %v3056_v7, %v5694_v35  ;;  %v6017_v35 = vshll.u32 %v5237_v4, 16  ;;  %v6021_v4 = vshrl.u32 %v5339_v40, 16 }
 0x1ab   : > { %v953_v24 = vpack.c.b16 %v947_v1, %v947_v1  ;;  %v954_v7 = vpack.c.b16 %v948_v56, %v948_v56 }
 0x1ac   : > { %v5814_v62 = vadd.f32 %v3140_v38, %v3112_v23  ;;  %v3086_v39 = vadd.f32 %v3085_v31, %v3057_v29  ;;  %3287 = vmatmul.bf16.gmra.mxu0 %v1039_v28  ;;  %v1061_v63 = vrot.slane %v6017_v35, 2  ;;  %v1072_v60 = vrot.slane %v6021_v4, 1 }
 0x1ad   : > { %3316 = vmatmul.bf16.gmra.mxu1 %v1043_v50  ;;  %v1071_v38 = vsel %vm955_vm9, %v1046_v41, %v1070_v49  ;;  %v1098_v50 = vshll.u32 %v951_v18, 16  ;;  %v1104_v29 = vshrl.u32 %v952_v21, 16 }
 0x1ae   : > { %3345 = vmatmul.bf16.gmra.mxu2 %v1047_v16  ;;  %v1062_v20 = vor.u32 %v1061_v63, %v1060_v34  ;;  %v1113_v16 = vshrl.u32 %v953_v24, 16 }
 0x1af   : > { %3374 = vmatmul.bf16.gmra.mxu3 %v1051_v46  ;;  %v1116_v46 = vshll.u32 %v953_v24, 16  ;;  %v1106_v63 = vrot.slane %v1104_v29, 1 }
 0x1b0   : > { %v1063_v12 = vsel %vm955_vm9, %v1038_v30, %v1062_v20  ;;  %v1095_v30 = vshrl.u32 %v951_v18, 16 }
 0x1b1   : > { %v3114_v52 = vpop.f32.mrf.mxu2  ;;  %v3058_v53 = vpop.f32.mrf.mxu0  ;;  %v1118_v15 = vrot.slane %v1116_v46, 2 }
 0x1b2   : > { %v3143_v54 = vpop.f32.mrf.mxu3  ;;  %v3115_v57 = vadd.f32 %v3114_v52, %v3086_v39  ;;  %v3087_v55 = vpop.f32.mrf.mxu1  ;;  %v3059_v59 = vadd.f32 %v3058_v53, %v5739_v26  ;;  %v1074_v26 = vor.u32 %v1073_v13, %v1072_v60  ;;  %v1122_v39 = vshrl.u32 %v954_v7, 16 }
 0x1b3   : > { %v1115_v53 = vrot.slane %v1113_v16, 1 }
 0x1b4   : > { %v5833_v5 = vadd.f32 %v3143_v54, %v3115_v57  ;;  %v3088_v6 = vadd.f32 %v3087_v55, %v3059_v59  ;;  %v1075_v23 = vsel %vm955_vm9, %v1050_v11, %v1074_v26  ;;  %v1097_v54 = vrot.slane %v1095_v30, 1 }
 0x1b5   : > { %v1100_v11 = vrot.slane %v1098_v50, 2  ;;  %v1109_v57 = vrot.slane %v1107_v37, 2  ;;  %v1124_v43 = vrot.slane %v1122_v39, 1  ;;  %v1119_v42 = vor.u32 %v1118_v15, %v1115_v53 }
 0x1b7   : > { %v1101_v58 = vor.u32 %v1100_v11, %v1097_v54  ;;  %v1110_v59 = vor.u32 %v1109_v57, %v1106_v63  ;;  %v1120_v0 = vsel %vm955_vm9, %v1070_v49, %v1119_v42 }
 0x1b9   : > { %v3116_v33 = vpop.f32.mrf.mxu2  ;;  %v3061_v40 = vpop.f32.mrf.mxu0  ;;  %v1111_v19 = vsel %vm955_vm9, %v1066_v32, %v1110_v59 }
 0x1ba   : > { %v3145_v61 = vpop.f32.mrf.mxu3  ;;  %v3117_v36 = vadd.f32 %v3116_v33, %v3088_v6  ;;  %v3090_v45 = vpop.f32.mrf.mxu1  ;;  %v3062_v14 = vadd.f32 %v3061_v40, %v5754_v48  ;;  %v1125_v48 = vshll.u32 %v954_v7, 16  ;;  %v1102_v6 = vsel %vm955_vm9, %v1062_v20, %v1101_v58 }
 0x1bc   : > { %v5840_v31 = vadd.f32 %v3145_v61, %v3117_v36  ;;  %v3091_v28 = vadd.f32 %v3090_v45, %v3062_v14  ;;  %3292 = vmatmul.bf16.gmra.mxu0 %v1063_v12  ;;  %v1127_v10 = vrot.slane %v1125_v48, 2 }
 0x1bd   : > { %3321 = vmatmul.bf16.gmra.mxu1 %v1067_v2 }
 0x1be   : > { %3350 = vmatmul.bf16.gmra.mxu2 %v1071_v38  ;;  %v1128_v44 = vor.u32 %v1127_v10, %v1124_v43 }
 0x1bf   : > { %3379 = vmatmul.bf16.gmra.mxu3 %v1075_v23 }
 0x1c0   : > { %v1129_v1 = vsel %vm955_vm9, %v1074_v26, %v1128_v44 }
 0x1c1   : > { %v3119_v52 = vpop.f32.mrf.mxu2  ;;  %v3063_v34 = vpop.f32.mrf.mxu0 }
 0x1c2   : > { %v3148_v41 = vpop.f32.mrf.mxu3  ;;  %v3120_v51 = vadd.f32 %v3119_v52, %v3091_v28  ;;  %v3092_v35 = vpop.f32.mrf.mxu1  ;;  %v3064_v55 = vadd.f32 %v3063_v34, %v5769_v22 }
 0x1c4   : > { %v5843_v9 = vadd.f32 %v3148_v41, %v3120_v51  ;;  %v3093_v8 = vadd.f32 %v3092_v35, %v3064_v55 }
 0x1c9   : > { %v3121_v4 = vpop.f32.mrf.mxu2  ;;  %v3066_v13 = vpop.f32.mrf.mxu0 }
 0x1ca   : > { %v3150_v60 = vpop.f32.mrf.mxu3  ;;  %v3122_v25 = vadd.f32 %v3121_v4, %v3093_v8  ;;  %v3095_v27 = vpop.f32.mrf.mxu1  ;;  %v3067_v22 = vadd.f32 %v3066_v13, %v5776_v47 }
 0x1cc   : > { %v3151_v56 = vadd.f32 %v3150_v60, %v3122_v25  ;;  %v3096_v33 = vadd.f32 %v3095_v27, %v3067_v22  ;;  %3297 = vmatmul.bf16.gmra.mxu0 %v1102_v6 }
 0x1cd   : > { %3326 = vmatmul.bf16.gmra.mxu1 %v1111_v19 }
 0x1ce   : > { %3355 = vmatmul.bf16.gmra.mxu2 %v1120_v0 }
 0x1cf   : > { %3384 = vmatmul.bf16.gmra.mxu3 %v1129_v1 }
 0x1d1   : > { %v3124_v61 = vpop.f32.mrf.mxu2  ;;  %v3068_v36 = vpop.f32.mrf.mxu0 }
 0x1d2   : > { %v3153_v12 = vpop.f32.mrf.mxu3  ;;  %v3125_v18 = vadd.f32 %v3124_v61, %v3096_v33  ;;  %v3097_v40 = vpop.f32.mrf.mxu1  ;;  %v3069_v20 = vadd.f32 %v3068_v36, %v5783_v17 }
 0x1d4   : > { %v3154_v32 = vadd.f32 %v3153_v12, %v3125_v18  ;;  %v3098_v45 = vadd.f32 %v3097_v40, %v3069_v20 }
 0x1d9   : > { %v3126_v47 = vpop.f32.mrf.mxu2  ;;  %v3167_v21 = vpop.f32.mrf.mxu0 }
 0x1da   : > { %v3155_v2 = vpop.f32.mrf.mxu3  ;;  %v3127_v49 = vadd.f32 %v3126_v47, %v3098_v45  ;;  %v3196_v26 = vpop.f32.mrf.mxu1  ;;  %v3168_v24 = vadd.f32 %v3167_v21, %v5803_v3 }
 0x1dc   : > { %v5852_v14 = vadd.f32 %v3155_v2, %v3127_v49  ;;  %v3197_v38 = vadd.f32 %v3196_v26, %v3168_v24  ;;  %v3450_v26 = vld [vmem:[#allocation9 + $0x70] sm:$0xff] }
 0x1e1   : > { %v3225_v23 = vpop.f32.mrf.mxu2  ;;  %v3169_v30 = vpop.f32.mrf.mxu0 }
 0x1e2   : > { %v3254_v7 = vpop.f32.mrf.mxu3  ;;  %v3226_v28 = vadd.f32 %v3225_v23, %v3197_v38  ;;  %v3198_v50 = vpop.f32.mrf.mxu1  ;;  %v3170_v29 = vadd.f32 %v3169_v30, %v5814_v62 }
 0x1e4   : > { %v3255_v17 = vadd.f32 %v3254_v7, %v3226_v28  ;;  %v3199_v37 = vadd.f32 %v3198_v50, %v3170_v29 }
 0x1e9   : > { %v3227_v16 = vpop.f32.mrf.mxu2  ;;  %v3172_v48 = vpop.f32.mrf.mxu0 }
 0x1ea   : > { %v3256_v46 = vpop.f32.mrf.mxu3  ;;  %v3228_v39 = vadd.f32 %v3227_v16, %v3199_v37  ;;  %v3201_v52 = vpop.f32.mrf.mxu1  ;;  %v3173_v41 = vadd.f32 %v3172_v48, %v5833_v5 }
 0x1ec   : > { %v3257_v3 = vadd.f32 %v3256_v46, %v3228_v39  ;;  %v3202_v54 = vadd.f32 %v3201_v52, %v3173_v41 }
 0x1f1   : > { %v3230_v11 = vpop.f32.mrf.mxu2  ;;  %v3174_v35 = vpop.f32.mrf.mxu0 }
 0x1f2   : > { %v3259_v51 = vpop.f32.mrf.mxu3  ;;  %v3231_v34 = vadd.f32 %v3230_v11, %v3202_v54  ;;  %v3203_v63 = vpop.f32.mrf.mxu1  ;;  %v3175_v57 = vadd.f32 %v3174_v35, %v5840_v31  ;;  %v5874_v54 = vld [vmem:[#allocation8] sm:$0xff]  ;;  %v5876_v11 = vld [vmem:[#allocation8 + $0x8] sm:$0xff]  ;;  %v3449_v35 = vld [vmem:[#allocation9 + $0x68] sm:$0xff] }
 0x1f4   : > { %v3260_v53 = vadd.f32 %v3259_v51, %v3231_v34  ;;  %v3204_v62 = vadd.f32 %v3203_v63, %v3175_v57  ;;  %v3448_v63 = vld [vmem:[#allocation9 + $0x60] sm:$0xff] }
 0x1f9   : > { %v3232_v55 = vpop.f32.mrf.mxu2  ;;  %v3177_v10 = vpop.f32.mrf.mxu0 }
 0x1fa   : > { %v3261_v15 = vpop.f32.mrf.mxu3  ;;  %v3233_v43 = vadd.f32 %v3232_v55, %v3204_v62  ;;  %v3206_v8 = vpop.f32.mrf.mxu1  ;;  %v3178_v58 = vadd.f32 %v3177_v10, %v5843_v9  ;;  %v3447_v62 = vld [vmem:[#allocation9 + $0x58] sm:$0xff] }
 0x1fc   : > { %v5858_v59 = vadd.f32 %v3261_v15, %v3233_v43  ;;  %v3207_v5 = vadd.f32 %v3206_v8, %v3178_v58 }
 0x201   : > { %v3235_v42 = vpop.f32.mrf.mxu2  ;;  %v3179_v60 = vpop.f32.mrf.mxu0 }
 0x202   : > { %v3264_v44 = vpop.f32.mrf.mxu3  ;;  %v3236_v4 = vadd.f32 %v3235_v42, %v3207_v5  ;;  %v3208_v25 = vpop.f32.mrf.mxu1  ;;  %v3180_v13 = vadd.f32 %v3179_v60, %v3151_v56  ;;  %v3446_v5 = vld [vmem:[#allocation9 + $0x50] sm:$0xff] }
 0x204   : > { %v5860_v27 = vadd.f32 %v3264_v44, %v3236_v4  ;;  %v3209_v31 = vadd.f32 %v3208_v25, %v3180_v13 }
 0x209   : > { %v3237_v6 = vpop.f32.mrf.mxu2  ;;  %v3182_v0 = vpop.f32.mrf.mxu0 }
 0x20a   : > { %v3266_v19 = vpop.f32.mrf.mxu3  ;;  %v3238_v22 = vadd.f32 %v3237_v6, %v3209_v31  ;;  %v3211_v1 = vpop.f32.mrf.mxu1  ;;  %v3183_v33 = vadd.f32 %v3182_v0, %v3154_v32  ;;  %v3451_v32 = vld [vmem:[#allocation9 + $0x78] sm:$0xff] }
 0x20b   : > { %3467 = vmatpush.msra.mxu0 %v3451_v32  ;;  %v3442_v32 = vld [vmem:[#allocation9 + $0x30] sm:$0xff] }
 0x20c   : > { %v5862_v61 = vadd.f32 %v3266_v19, %v3238_v22  ;;  %v3212_v9 = vadd.f32 %v3211_v1, %v3183_v33  ;;  %v3445_v1 = vld [vmem:[#allocation9 + $0x48] sm:$0xff] }
 0x20d   : > { %3468 = vmatpush.msra.mxu0 %v3450_v26 }
 0x20f   : > { %3469 = vmatpush.msra.mxu0 %v3449_v35 }
 0x211   : > { %v3240_v12 = vpop.f32.mrf.mxu2  ;;  %v5864_v40 = vpop.f32.mrf.mxu0  ;;  %3470 = vmatpush.msra.mxu0 %v3448_v63 }
 0x212   : > { %v3269_v18 = vpop.f32.mrf.mxu3  ;;  %v3241_v36 = vadd.f32 %v3240_v12, %v3212_v9  ;;  %v5866_v20 = vpop.f32.mrf.mxu1 }
 0x213   : > { %3471 = vmatpush.msra.mxu0 %v3447_v62 }
 0x214   : > { %v5868_v56 = vadd.f32 %v3269_v18, %v3241_v36  ;;  %v3444_v18 = vld [vmem:[#allocation9 + $0x40] sm:$0xff]  ;;  %v3443_v36 = vld [vmem:[#allocation9 + $0x38] sm:$0xff] }
 0x215   : > { %3472 = vmatpush.msra.mxu0 %v3446_v5 }
 0x217   : > { %3473 = vmatpush.msra.mxu0 %v3445_v1 }
 0x219   : > { %v5870_v45 = vpop.f32.mrf.mxu2  ;;  %v3283_v2 = vpop.f32.mrf.mxu0  ;;  %3474 = vmatpush.msra.mxu0 %v3444_v18 }
 0x21a   : > { %v5872_v47 = vpop.f32.mrf.mxu3  ;;  %v3312_v49 = vpop.f32.mrf.mxu1  ;;  %v3284_v21 = vadd.f32 %v3283_v2, %v3255_v17 }
 0x21b   : > { %3475 = vmatpush.msra.mxu0 %v3443_v36 }
 0x21c   : > { %v3313_v23 = vadd.f32 %v3312_v49, %v3284_v21 }
 0x21d   : > { %3476 = vmatpush.msra.mxu0 %v3442_v32 }
 0x221   : > { %v3341_v24 = vpop.f32.mrf.mxu2  ;;  %v3285_v7 = vpop.f32.mrf.mxu0 }
 0x222   : > { %v3370_v38 = vpop.f32.mrf.mxu3  ;;  %v3314_v28 = vpop.f32.mrf.mxu1  ;;  %v3342_v30 = vadd.f32 %v3341_v24, %v3313_v23  ;;  %v3286_v50 = vadd.f32 %v3285_v7, %v3257_v3 }
 0x224   : > { %v3371_v29 = vadd.f32 %v3370_v38, %v3342_v30  ;;  %v3315_v37 = vadd.f32 %v3314_v28, %v3286_v50  ;;  %v3441_v50 = vld [vmem:[#allocation9 + $0x28] sm:$0xff] }
 0x225   : > { %3477 = vmatpush.msra.mxu0 %v3441_v50 }
 0x226   : > { %v3390_v41 = vmax.f32 %v3371_v29, 0.0 }
 0x228   : > { %v3400_v3 = vmul.f32 %v5874_v54, %v3390_v41 }
 0x229   : > { %v3343_v16 = vpop.f32.mrf.mxu2  ;;  %v3288_v48 = vpop.f32.mrf.mxu0 }
 0x22a   : > { %v3372_v46 = vpop.f32.mrf.mxu3  ;;  %v3344_v39 = vadd.f32 %v3343_v16, %v3315_v37  ;;  %v3317_v52 = vpop.f32.mrf.mxu1  ;;  %v3289_v34 = vadd.f32 %v3288_v48, %v3260_v53  ;;  %v3185_v16 = vadd.f32 %v5864_v40, %v5852_v14  ;;  %v3437_v14 = vld [vmem:[#allocation9 + $0x8] sm:$0xff] }
 0x22c   : > { %v3373_v17 = vadd.f32 %v3372_v46, %v3344_v39  ;;  %v3318_v10 = vadd.f32 %v3317_v52, %v3289_v34  ;;  %v3440_v46 = vld [vmem:[#allocation9 + $0x20] sm:$0xff] }
 0x22d   : > { %3478 = vmatpush.msra.mxu0 %v3440_v46 }
 0x22e   : > { %v3391_v51 = vmax.f32 %v3373_v17, 0.0 }
 0x230   : > { %v3401_v57 = vmul.f32 %v5876_v11, %v3391_v51  ;;  %v3439_v51 = vld [vmem:[#allocation9 + $0x18] sm:$0xff] }
 0x231   : > { %v3346_v55 = vpop.f32.mrf.mxu2  ;;  %v3290_v8 = vpop.f32.mrf.mxu0  ;;  %3479 = vmatpush.msra.mxu0 %v3439_v51 }
 0x232   : > { %v3375_v15 = vpop.f32.mrf.mxu3  ;;  %v3408_v43 = vmax.f32 %v3400_v3, %v3401_v57  ;;  %v3319_v58 = vpop.f32.mrf.mxu1  ;;  %v3347_v42 = vadd.f32 %v3346_v55, %v3318_v10  ;;  %v3291_v53 = vadd.f32 %v3290_v8, %v5858_v59  ;;  %v3214_v3 = vadd.f32 %v5866_v20, %v3185_v16  ;;  %v3438_v57 = vld [vmem:[#allocation9 + $0x10] sm:$0xff]  ;;  %v3436_v10 = vld [vmem:[#allocation9] sm:$0xff] }
 0x233   : > { %3480 = vmatpush.msra.mxu0 %v3438_v57 }
 0x234   : > { %v3376_v44 = vadd.f32 %v3375_v15, %v3347_v42  ;;  %v3320_v4 = vadd.f32 %v3319_v58, %v3291_v53  ;;  %v3409_v13 = vrot.slane %v3408_v43, 4  ;;  %v3243_v40 = vadd.f32 %v5870_v45, %v3214_v3 }
 0x235   : > { %3481 = vmatpush.msra.mxu0 %v3437_v14 }
 0x236   : > { %v3392_v22 = vmax.f32 %v3376_v44, 0.0  ;;  %v3410_v33 = vmax.f32 %v3408_v43, %v3409_v13 }
 0x237   : > { %3482 = vmatpush.msra.mxu0 %v3436_v10 }
 0x238   : > { %v3402_v59 = vmul.f32 %v5874_v54, %v3392_v22  ;;  %v3411_v26 = vrot.slane %v3410_v33, 2 }
 0x239   : > { %v3348_v60 = vpop.f32.mrf.mxu2  ;;  %v3293_v6 = vpop.f32.mrf.mxu0 }
 0x23a   : > { %v3377_v25 = vpop.f32.mrf.mxu3  ;;  %v3349_v31 = vadd.f32 %v3348_v60, %v3320_v4  ;;  %v3322_v19 = vpop.f32.mrf.mxu1  ;;  %v3294_v12 = vadd.f32 %v3293_v6, %v5860_v27  ;;  %v3412_v29 = vmax.f32 %v3410_v33, %v3411_v26 }
 0x23c   : > { %v3378_v0 = vadd.f32 %v3377_v25, %v3349_v31  ;;  %v3323_v38 = vadd.f32 %v3322_v19, %v3294_v12  ;;  %v3413_v34 = vrot.slane %v3412_v29, 1  ;;  %v3272_v25 = vadd.f32 %v5872_v47, %v3243_v40 }
 0x23e   : > { %v3393_v9 = vmax.f32 %v3378_v0, 0.0  ;;  %v3414_v8 = vmax.f32 %v3412_v29, %v3413_v34 }
 0x240   : > { %v3403_v2 = vmul.f32 %v5876_v11, %v3393_v9 }
 0x241   : > { %v3351_v49 = vpop.f32.mrf.mxu2  ;;  %v3295_v23 = vpop.f32.mrf.mxu0 }
 0x242   : > { %v3380_v21 = vpop.f32.mrf.mxu3  ;;  %v3415_v24 = vmax.f32 %v3402_v59, %v3403_v2  ;;  %v3324_v7 = vpop.f32.mrf.mxu1  ;;  %v3352_v30 = vadd.f32 %v3351_v49, %v3323_v38  ;;  %v3296_v27 = vadd.f32 %v3295_v23, %v5862_v61 }
 0x244   : > { %v3416_v28 = vrot.slane %v3415_v24, 4  ;;  %v3381_v48 = vadd.f32 %v3380_v21, %v3352_v30  ;;  %v3325_v52 = vadd.f32 %v3324_v7, %v3296_v27 }
 0x246   : > { %v3417_v37 = vmax.f32 %v3415_v24, %v3416_v28  ;;  %v3394_v55 = vmax.f32 %v3381_v48, 0.0 }
 0x248   : > { %v3418_v39 = vrot.slane %v3417_v37, 2  ;;  %v3404_v53 = vmul.f32 %v5874_v54, %v3394_v55 }
 0x249   : > { %v3353_v41 = vpop.f32.mrf.mxu2  ;;  %v3298_v61 = vpop.f32.mrf.mxu0 }
 0x24a   : > { %v3382_v17 = vpop.f32.mrf.mxu3  ;;  %v3419_v35 = vmax.f32 %v3417_v37, %v3418_v39  ;;  %v3354_v63 = vadd.f32 %v3353_v41, %v3325_v52  ;;  %v3327_v43 = vpop.f32.mrf.mxu1  ;;  %v3299_v42 = vadd.f32 %v3298_v61, %v5868_v56 }
 0x24c   : > { %v3420_v62 = vrot.slane %v3419_v35, 1  ;;  %v3383_v15 = vadd.f32 %v3382_v17, %v3354_v63  ;;  %v3328_v13 = vadd.f32 %v3327_v43, %v3299_v42 }
 0x24e   : > { %v3421_v58 = vmax.f32 %v3419_v35, %v3420_v62  ;;  %v3395_v5 = vmax.f32 %v3383_v15, 0.0 }
 0x250   : > { %v3405_v20 = vmul.f32 %v5876_v11, %v3395_v5  ;;  %v3461_v44 = vsel %vm3460_vm10, %v3421_v58, %v3414_v8 }
 0x251   : > { %v3356_v4 = vpop.f32.mrf.mxu2  ;;  %v3300_v31 = vpop.f32.mrf.mxu0 }
 0x252   : > { %v3385_v60 = vpop.f32.mrf.mxu3  ;;  %v3422_v45 = vmax.f32 %v3404_v53, %v3405_v20  ;;  %v3357_v19 = vadd.f32 %v3356_v4, %v3328_v13  ;;  %v3301_v22 = vadd.f32 %v3300_v31, %v3272_v25  ;;  %v3329_v1 = vpop.f32.mrf.mxu1 }
 0x254   : > { %v3423_v6 = vrot.slane %v3422_v45, 4  ;;  %v3386_v33 = vadd.f32 %v3385_v60, %v3357_v19  ;;  %v3330_v9 = vadd.f32 %v3329_v1, %v3301_v22 }
 0x256   : > { %v3424_v0 = vmax.f32 %v3422_v45, %v3423_v6  ;;  %v3396_v49 = vmax.f32 %v3386_v33, 0.0 }
 0x258   : > { %v3425_v56 = vrot.slane %v3424_v0, 2  ;;  %v3406_v26 = vmul.f32 %v5874_v54, %v3396_v49  ;;  %v4758_v54 = vld [vmem:[%s5937_s5] ss:$0 sm:$0xff] }
 0x259   : > { %v3358_v12 = vpop.f32.mrf.mxu2 }
 0x25a   : > { %v3426_v18 = vmax.f32 %v3424_v0, %v3425_v56  ;;  %v3359_v36 = vadd.f32 %v3358_v12, %v3330_v9  ;;  %v3387_v59 = vpop.f32.mrf.mxu3 }
 0x25c   : > { %v3427_v2 = vrot.slane %v3426_v18, 1  ;;  %v3388_v21 = vadd.f32 %v3387_v59, %v3359_v36 }
 0x25e   : > { %v3428_v47 = vmax.f32 %v3426_v18, %v3427_v2  ;;  %v3397_v32 = vmax.f32 %v3388_v21, 0.0 }
 0x260   : > { %v3407_v24 = vmul.f32 %v5876_v11, %v3397_v32  ;;  %v3463_v38 = vsel %vm3462_vm11, %v3428_v47, %v3461_v44 }
 0x262   : > { %v3429_v23 = vmax.f32 %v3406_v26, %v3407_v24 }
 0x264   : > { %v3430_v7 = vrot.slane %v3429_v23, 4 }
 0x266   : > { %v3431_v28 = vmax.f32 %v3429_v23, %v3430_v7 }
 0x268   : > { %v3432_v30 = vrot.slane %v3431_v28, 2 }
 0x26a   : > { %v3433_v27 = vmax.f32 %v3431_v28, %v3432_v30 }
 0x26c   : > { %v3434_v50 = vrot.slane %v3433_v27, 1 }
 0x26e   : > { %v3435_v29 = vmax.f32 %v3433_v27, %v3434_v50 }
 0x270   : > { %v3465_v37 = vsel %vm3464_vm12, %v3435_v29, %v3463_v38 }
 0x271   : > { %3483 = vmatmul.f32.vlgmr.msra.gmra.mxu0 %v3465_v37 }
 0x2ee   : > { %v3484_v11 = vpop.f32.mrf.mxu0 }
 0x2ef   : > { %v3485_v16 = vadd.f32 %v4758_v54, %v3484_v11 }
 0x2f1   : > { %3487 = vst [vmem:[%s322_s18] sm:$0xf] %v3485_v16 }
 0x2f2   : > { %4906 = shalt.err (!%p4903_p10)
}
 0x2f3   : > { %4688 = dma.vmem_to_hbm [thread:$0]  (%p5082_p7), %s3502_s19, 64, %s3504_s16, %s3489_s17  }
 0x2f4 PF: > { %s3515_s20 = sand.u32 1, %s4941_s21   ;;  %p6023_p12 = scmp.ge.s32.totalorder %s4953_s24, 2 }
 0x2f5   : > { %s3516_s29 = scalar_lea.sflag [#allocation5], %s3515_s20 }
 0x2f6   : > { %p4705_p13 = pnand %p6023_p12, %p5034_p6 }
 0x2f8   : > { %p4706_p0 = pneg %p4705_p13 }
 0x2fa   : > { %4936 = dma.done.wait (%p4706_p0), %s3516_s29, 64  }
 0x2fb   : > { %4938 = vsyncadd (%p4706_p0), %s3516_s29, 4294967232  ;;  %p21_p3 = scmp.ge.s32.totalorder %s5068_s10, 4   ;;  %s6024_s21 = smov %s4945_s22 }
 0x2fc   : > { %s6025_s22 = smov %s4949_s23  ;;  %s6026_s23 = smov %s5078_s14 }
 0x2fd   : > { %s6027_s24 = smov %s5068_s10  ;;  %23 = sbr.rel (!%p21_p3) target bundleno = 10 (0xa), region = 101 }
 0x302   :  { %3522 = vsyncpa [#allocation4], 1 }
 0x303   :  { %3524 = vsyncpa [#allocation4 + $0x1], 1 }
 0x304   :  { %3525 = vsyncpa [#allocation7], 1 }
 0x305   :  { %3526 = vsyncpa [#allocation10], 1 }
 0x306   :  { %3527 = vsyncpa [#allocation5], 1 }
 0x307   :  { %3529 = vsyncpa [#allocation5 + $0x1], 1 }

</bundles_post_ra>
